<compile_context>
chip_gen: v6e
topology: v6e:2x2x1
jax: 0.10.0
libtpu: 0.0.40
codegen_flags: <defaults>
</compile_context>

<pallas_src>
import functools

import jax
import jax.numpy as jnp
from jax import lax
from jax.experimental import pallas as pl
from jax.experimental.pallas import tpu as pltpu


# ----------------------------------------------------------------------------
# Fused EBlock kernel (one grid step per batch element)
# ----------------------------------------------------------------------------
def _eblock_kernel(*refs, H, W, Cin, Cout, sh, sw, dtime, has_skip, max_pw):
    refs = list(refs)
    slab = refs.pop()                 # VMEM scratch: (Cin, Hp*Wp) padded-flat
    o_ref = refs.pop()                # (Cout, Ho*Wo)
    it = iter(refs)
    x_ref = next(it)                  # (Cin, Hp*Wp) zero-padded input (flat)
    w1_ref, b1_ref = next(it), next(it)
    if dtime:
        wt1_ref, bt1_ref = next(it), next(it)
        wt2_ref, bt2_ref = next(it), next(it)
    w2_ref, b2_ref = next(it), next(it)
    if has_skip:
        wsk_ref, bsk_ref = next(it), next(it)

    Hp = H + 2
    Wp = W + 2 * max_pw
    q0 = Wp + max_pw                  # flat index of interior (0, 0)
    L = (H - 1) * Wp + W              # span covering all interior positions
    Ho = (H - 1) // sh + 1
    Wo = (W - 1) // sw + 1

    # 0/1 mask of interior columns over the span (borders between rows -> 0).
    span_col = jax.lax.broadcasted_iota(jnp.int32, (1, L), 1) % Wp
    interior = (span_col < W).astype(jnp.float32)

    def lrelu(v):
        return jnp.where(v > 0, v, 0.3 * v)

    def conv3x3(src_ref, w_ref, b_ref, dw):
        # 3x3 conv, stride 1, dilation (1, dw), on the flat padded image:
        # each tap is a contiguous lane slice (row stride = Wp), the 9 taps are
        # stacked along sublanes and contracted by one (Cout, 9*Cin) matmul.
        taps = []
        for kh in range(3):
            for kw in range(3):
                s = kh * Wp + max_pw + (kw - 1) * dw
                taps.append(src_ref[:, s:s + L])
        patches = jnp.concatenate(taps, axis=0)              # (9*Cin, L)
        return jnp.dot(w_ref[...], patches,
                       preferred_element_type=jnp.float32) + b_ref[...]

    # Zero only the halo strips (top pad row + first left pad, last right pad +
    # bottom pad row); the span itself is always fully rewritten (masked).
    slab[:, 0:q0] = jnp.zeros((Cin, q0), jnp.float32)
    slab[:, q0 + L:Hp * Wp] = jnp.zeros((Cin, Hp * Wp - q0 - L), jnp.float32)

    # conv1e + leaky_relu(0.3): reads the padded input directly, no copy-in.
    h = lrelu(conv3x3(x_ref, w1_ref, b1_ref, dw=1))
    slab[:, q0:q0 + L] = h * interior

    # TDBlock: dilation (1,3) then (1,9) in time, each + leaky_relu(0.3).
    if dtime:
        h = lrelu(conv3x3(slab, wt1_ref, bt1_ref, dw=3))
        slab[:, q0:q0 + L] = h * interior
        h = lrelu(conv3x3(slab, wt2_ref, bt2_ref, dw=9))
        slab[:, q0:q0 + L] = h * interior

    # conv2e at full resolution (stride applied afterwards -- linear op).
    y = conv3x3(slab, w2_ref, b2_ref, dw=1)                   # (Cout, L)

    # Skip path (1x1 conv or identity) + residual add, also at full res.
    if has_skip:
        y = y + jnp.dot(wsk_ref[...], x_ref[:, q0:q0 + L],
                        preferred_element_type=jnp.float32) + bsk_ref[...]
    else:
        y = y + x_ref[:, q0:q0 + L]          # stride 1 and Cin == Cout

    # Strided extraction (Cout, L) -> (Cout, Ho*Wo): per output row, one
    # contiguous slice; per-row (W, Wo) 0/1 matmul handles the time stride.
    if sw != 1:
        sel_w = (jax.lax.broadcasted_iota(jnp.int32, (W, Wo), 0)
                 == sw * jax.lax.broadcasted_iota(jnp.int32, (W, Wo), 1)
                 ).astype(jnp.float32)
    pieces = []
    for io in range(Ho):
        base = io * sh * Wp
        row = y[:, base:base + W]                             # (Cout, W)
        if sw != 1:
            row = jnp.dot(row, sel_w, preferred_element_type=jnp.float32)
        pieces.append(row)
    out = pieces[0] if Ho == 1 else jnp.concatenate(pieces, axis=1)
    o_ref[...] = out.astype(o_ref.dtype)


# ----------------------------------------------------------------------------
# Wrapper: builds specs/args and calls the fused kernel.  Input/output: NCHW.
# ----------------------------------------------------------------------------
def eblock_forward(params, x_nchw, *, Stime, Sfreq, Dtime):
    B, Cin, H, W = x_nchw.shape
    sh, sw = Sfreq, Stime
    Cout = params["conv2e"][0].shape[-1]
    has_skip = "skip" in params
    if not has_skip:
        assert sh == 1 and sw == 1 and Cin == Cout, (
            "identity skip requires stride 1 and Cin == Cout")
    max_pw = 9 if Dtime else 1
    Hp, Wp = H + 2, W + 2 * max_pw
    Ho = (H - 1) // sh + 1
    Wo = (W - 1) // sw + 1

    # Zero-pad once (rows by 1, cols by max_pw) and flatten spatial; no
    # NCHW<->NHWC transposes anywhere.
    xp = jnp.pad(x_nchw.astype(jnp.float32),
                 ((0, 0), (0, 0), (1, 1), (max_pw, max_pw)))
    xp = xp.reshape(B, Cin, Hp * Wp)

    def fold_w(w):        # (KH, KW, Cin, Cout) -> (Cout, KH*KW*Cin)
        return jnp.transpose(w.reshape(-1, w.shape[-1])).astype(jnp.float32)

    def fold_b(b):        # (Cout,) -> (Cout, 1)  (broadcasts across lanes)
        return b.reshape(-1, 1).astype(jnp.float32)

    args = [xp]
    in_specs = [pl.BlockSpec((None, Cin, Hp * Wp), lambda b: (b, 0, 0))]

    def add_conv(name):
        w, bias = params[name]
        wf, bf = fold_w(w), fold_b(bias)
        args.extend([wf, bf])
        in_specs.append(pl.BlockSpec(wf.shape, lambda b: (0, 0)))
        in_specs.append(pl.BlockSpec(bf.shape, lambda b: (0, 0)))

    add_conv("conv1e")
    if Dtime:
        add_conv("td1")
        add_conv("td2")
    add_conv("conv2e")
    if has_skip:
        add_conv("skip")

    kernel = functools.partial(
        _eblock_kernel, H=H, W=W, Cin=Cin, Cout=Cout, sh=sh, sw=sw,
        dtime=Dtime, has_skip=has_skip, max_pw=max_pw)

    out = pl.pallas_call(
        kernel,
        out_shape=jax.ShapeDtypeStruct((B, Cout, Ho * Wo), jnp.float32),
        grid=(B,),
        in_specs=in_specs,
        out_specs=pl.BlockSpec((None, Cout, Ho * Wo), lambda b: (b, 0, 0)),
        scratch_shapes=[pltpu.VMEM((Cin, Hp * Wp), jnp.float32)],
        compiler_params=pltpu.CompilerParams(
            dimension_semantics=("parallel",)),
    )(*args)
    return out.reshape(B, Cout, Ho, Wo)                      # free reshape


# ----------------------------------------------------------------------------
# Parameter init (HWIO weights, matches the reference convention)
# ----------------------------------------------------------------------------
def _conv_params(key, kh, kw, cin, cout):
    k1, k2 = jax.random.split(key)
    w = 0.1 * jax.random.normal(k1, (kh, kw, cin, cout), jnp.float32)
    b = 0.1 * jax.random.normal(k2, (cout,), jnp.float32)
    return w, b


def init_eblock_params(key, Cin, Cout, Stime, Sfreq, Dtime):
    keys = jax.random.split(key, 5)
    params = {"conv1e": _conv_params(keys[0], 3, 3, Cin, Cin)}
    if Dtime:
        params["td1"] = _conv_params(keys[1], 3, 3, Cin, Cin)
        params["td2"] = _conv_params(keys[2], 3, 3, Cin, Cin)
    params["conv2e"] = _conv_params(keys[3], 3, 3, Cin, Cout)
    if (Stime != 1 or Sfreq != 1) or Cin != Cout:
        params["skip"] = _conv_params(keys[4], 1, 1, Cin, Cout)
    return params


# ----------------------------------------------------------------------------
# Pure-JAX reference (correctness check)
# ----------------------------------------------------------------------------
def _conv_ref(x, w, b, stride, dilation, padding):
    y = lax.conv_general_dilated(
        x, w, window_strides=stride,
        padding=[(padding[0], padding[0]), (padding[1], padding[1])],
        rhs_dilation=dilation,
        dimension_numbers=("NHWC", "HWIO", "NHWC"))
    return y + b.reshape(1, 1, 1, -1)


def _lrelu(x, s=0.3):
    return jnp.where(x > 0, x, s * x)


def eblock_reference(params, x_nchw, *, Stime, Sfreq, Dtime):
    x = jnp.transpose(x_nchw, (0, 2, 3, 1))
    h = _lrelu(_conv_ref(x, *params["conv1e"], (1, 1), (1, 1), (1, 1)))
    if Dtime:
        h = _lrelu(_conv_ref(h, *params["td1"], (1, 1), (1, 3), (1, 3)))
        h = _lrelu(_conv_ref(h, *params["td2"], (1, 1), (1, 9), (1, 9)))
    y = _conv_ref(h, *params["conv2e"], (Sfreq, Stime), (1, 1), (1, 1))
    if "skip" in params:
        skip = _conv_ref(x, *params["skip"], (Sfreq, Stime), (1, 1), (0, 0))
    else:
        skip = x
    return jnp.transpose(y + skip, (0, 3, 1, 2))


if __name__ == "__main__":
    # EBlock(Cin=4, Cout=8, Stime=2, Sfreq=2, Dtime=True); x is NCHW.
    Cin, Cout, Stime, Sfreq, Dtime = 4, 8, 2, 2, True
    B, H, W = 2, 16, 16

    key = jax.random.PRNGKey(0)
    kx, kp = jax.random.split(key)
    x = jax.random.normal(kx, (B, Cin, H, W), jnp.float32)
    params = init_eblock_params(kp, Cin, Cout, Stime, Sfreq, Dtime)

    fwd = jax.jit(functools.partial(
        eblock_forward, Stime=Stime, Sfreq=Sfreq, Dtime=Dtime))
    out = jax.block_until_ready(fwd(params, x))

    assert out.shape == (B, Cout, H // Sfreq, W // Stime), out.shape

    ref = eblock_reference(params, x, Stime=Stime, Sfreq=Sfreq, Dtime=Dtime)
    max_err = float(jnp.max(jnp.abs(out - ref)))
    assert max_err < 1e-3, f"mismatch vs reference: {max_err}"

    print("KERNEL_OK")
</pallas_src>

<mosaic_0001>
module attributes {stable_mosaic.version = 11 : i64} {
  func.func @_eblock_kernel(%arg0: i32, %arg1: memref<1x4x612xf32, #tpu.memory_space<vmem>>, %arg2: memref<4x36xf32, #tpu.memory_space<vmem>>, %arg3: memref<4x1xf32, #tpu.memory_space<vmem>>, %arg4: memref<4x36xf32, #tpu.memory_space<vmem>>, %arg5: memref<4x1xf32, #tpu.memory_space<vmem>>, %arg6: memref<4x36xf32, #tpu.memory_space<vmem>>, %arg7: memref<4x1xf32, #tpu.memory_space<vmem>>, %arg8: memref<8x36xf32, #tpu.memory_space<vmem>>, %arg9: memref<8x1xf32, #tpu.memory_space<vmem>>, %arg10: memref<8x4xf32, #tpu.memory_space<vmem>>, %arg11: memref<8x1xf32, #tpu.memory_space<vmem>>, %arg12: memref<1x8x64xf32, #tpu.memory_space<vmem>>, %arg13: memref<4x612xf32, #tpu.memory_space<vmem>>) attributes {dimension_semantics = [#tpu.dimension_semantics<parallel>], iteration_bounds = array<i64: 2>, scalar_prefetch = 0 : i64, scratch_operands = 1 : i64, tpu.core_type = #tpu.core_type<tc>, window_params = [{transform_indices = @transform_0, window_bounds = array<i64: 1, 4, 612>}, {pipeline_mode = #tpu.pipeline_mode<synchronous>, transform_indices = @transform_1, window_bounds = array<i64: 4, 36>}, {pipeline_mode = #tpu.pipeline_mode<synchronous>, transform_indices = @transform_2, window_bounds = array<i64: 4, 1>}, {pipeline_mode = #tpu.pipeline_mode<synchronous>, transform_indices = @transform_3, window_bounds = array<i64: 4, 36>}, {pipeline_mode = #tpu.pipeline_mode<synchronous>, transform_indices = @transform_4, window_bounds = array<i64: 4, 1>}, {pipeline_mode = #tpu.pipeline_mode<synchronous>, transform_indices = @transform_5, window_bounds = array<i64: 4, 36>}, {pipeline_mode = #tpu.pipeline_mode<synchronous>, transform_indices = @transform_6, window_bounds = array<i64: 4, 1>}, {pipeline_mode = #tpu.pipeline_mode<synchronous>, transform_indices = @transform_7, window_bounds = array<i64: 8, 36>}, {pipeline_mode = #tpu.pipeline_mode<synchronous>, transform_indices = @transform_8, window_bounds = array<i64: 8, 1>}, {pipeline_mode = #tpu.pipeline_mode<synchronous>, transform_indices = @transform_9, window_bounds = array<i64: 8, 4>}, {pipeline_mode = #tpu.pipeline_mode<synchronous>, transform_indices = @transform_10, window_bounds = array<i64: 8, 1>}, {transform_indices = @transform_11, window_bounds = array<i64: 1, 8, 64>}]} {
    %0 = tpu.iota {dimensions = array<i32: 1>} : vector<1x526xi32>
    %c34_i32 = arith.constant 34 : i32
    %c0_i32 = arith.constant 0 : i32
    %1 = arith.cmpi eq, %c34_i32, %c0_i32 : i32
    %c1_i32 = arith.constant 1 : i32
    %2 = arith.select %1, %c1_i32, %c34_i32 : i32
    %3 = vector.broadcast %2 : i32 to vector<1x526xi32>
    %4 = arith.remsi %0, %3 : vector<1x526xi32>
    %c0_i32_0 = arith.constant 0 : i32
    %5 = vector.broadcast %c0_i32_0 : i32 to vector<1x526xi32>
    %6 = arith.cmpi ne, %4, %5 : vector<1x526xi32>
    %c0_i32_1 = arith.constant 0 : i32
    %7 = vector.broadcast %c0_i32_1 : i32 to vector<1x526xi32>
    %8 = arith.cmpi slt, %4, %7 : vector<1x526xi32>
    %c0_i32_2 = arith.constant 0 : i32
    %9 = arith.cmpi slt, %2, %c0_i32_2 : i32
    %10 = vector.broadcast %9 : i1 to vector<1x526xi1>
    %11 = vector.broadcast %10 : vector<1x526xi1> to vector<1x526xi1>
    %12 = arith.xori %8, %11 : vector<1x526xi1>
    %13 = arith.andi %12, %6 : vector<1x526xi1>
    %14 = vector.broadcast %2 : i32 to vector<1x526xi32>
    %15 = arith.addi %4, %14 : vector<1x526xi32>
    %16 = arith.select %13, %15, %4 : vector<1x526xi1>, vector<1x526xi32>
    %c16_i32 = arith.constant 16 : i32
    %17 = vector.broadcast %c16_i32 : i32 to vector<1x526xi32>
    %18 = arith.cmpi slt, %16, %17 : vector<1x526xi32>
    %19 = arith.extui %18 : vector<1x526xi1> to vector<1x526xi32>
    %20 = arith.sitofp %19 : vector<1x526xi32> to vector<1x526xf32>
    %cst = arith.constant 0.000000e+00 : f32
    %21 = vector.broadcast %cst : f32 to vector<4x43xf32>
    %c0 = arith.constant 0 : index
    %c0_3 = arith.constant 0 : index
    %22 = vector.load %arg13[%c0, %c0_3] : memref<4x612xf32, #tpu.memory_space<vmem>>, vector<4x43xf32>
    tpu.vector_store %arg13[%c0, %c0_3], %21 {strides = array<i32>} : memref<4x612xf32, #tpu.memory_space<vmem>>, vector<4x43xf32>,
    %cst_4 = arith.constant 0.000000e+00 : f32
    %23 = vector.broadcast %cst_4 : f32 to vector<4x43xf32>
    %c0_5 = arith.constant 0 : index
    %c569 = arith.constant 569 : index
    %24 = vector.load %arg13[%c0_5, %c569] : memref<4x612xf32, #tpu.memory_space<vmem>>, vector<4x43xf32>
    tpu.vector_store %arg13[%c0_5, %c569], %23 {strides = array<i32>} : memref<4x612xf32, #tpu.memory_space<vmem>>, vector<4x43xf32>,
    %c0_6 = arith.constant 0 : index
    %c0_7 = arith.constant 0 : index
    %c8 = arith.constant 8 : index
    %25 = vector.load %arg1[%c0_6, %c0_7, %c8] : memref<1x4x612xf32, #tpu.memory_space<vmem>>, vector<1x4x526xf32>
    %26 = vector.shape_cast %25 : vector<1x4x526xf32> to vector<4x526xf32>
    %c0_8 = arith.constant 0 : index
    %c0_9 = arith.constant 0 : index
    %c9 = arith.constant 9 : index
    %27 = vector.load %arg1[%c0_8, %c0_9, %c9] : memref<1x4x612xf32, #tpu.memory_space<vmem>>, vector<1x4x526xf32>
    %28 = vector.shape_cast %27 : vector<1x4x526xf32> to vector<4x526xf32>
    %c0_10 = arith.constant 0 : index
    %c0_11 = arith.constant 0 : index
    %c10 = arith.constant 10 : index
    %29 = vector.load %arg1[%c0_10, %c0_11, %c10] : memref<1x4x612xf32, #tpu.memory_space<vmem>>, vector<1x4x526xf32>
    %30 = vector.shape_cast %29 : vector<1x4x526xf32> to vector<4x526xf32>
    %c0_12 = arith.constant 0 : index
    %c0_13 = arith.constant 0 : index
    %c42 = arith.constant 42 : index
    %31 = vector.load %arg1[%c0_12, %c0_13, %c42] : memref<1x4x612xf32, #tpu.memory_space<vmem>>, vector<1x4x526xf32>
    %32 = vector.shape_cast %31 : vector<1x4x526xf32> to vector<4x526xf32>
    %c0_14 = arith.constant 0 : index
    %c0_15 = arith.constant 0 : index
    %c43 = arith.constant 43 : index
    %33 = vector.load %arg1[%c0_14, %c0_15, %c43] : memref<1x4x612xf32, #tpu.memory_space<vmem>>, vector<1x4x526xf32>
    %34 = vector.shape_cast %33 : vector<1x4x526xf32> to vector<4x526xf32>
    %c0_16 = arith.constant 0 : index
    %c0_17 = arith.constant 0 : index
    %c44 = arith.constant 44 : index
    %35 = vector.load %arg1[%c0_16, %c0_17, %c44] : memref<1x4x612xf32, #tpu.memory_space<vmem>>, vector<1x4x526xf32>
    %36 = vector.shape_cast %35 : vector<1x4x526xf32> to vector<4x526xf32>
    %c0_18 = arith.constant 0 : index
    %c0_19 = arith.constant 0 : index
    %c76 = arith.constant 76 : index
    %37 = vector.load %arg1[%c0_18, %c0_19, %c76] : memref<1x4x612xf32, #tpu.memory_space<vmem>>, vector<1x4x526xf32>
    %38 = vector.shape_cast %37 : vector<1x4x526xf32> to vector<4x526xf32>
    %c0_20 = arith.constant 0 : index
    %c0_21 = arith.constant 0 : index
    %c77 = arith.constant 77 : index
    %39 = vector.load %arg1[%c0_20, %c0_21, %c77] : memref<1x4x612xf32, #tpu.memory_space<vmem>>, vector<1x4x526xf32>
    %40 = vector.shape_cast %39 : vector<1x4x526xf32> to vector<4x526xf32>
    %c0_22 = arith.constant 0 : index
    %c0_23 = arith.constant 0 : index
    %c78 = arith.constant 78 : index
    %41 = vector.load %arg1[%c0_22, %c0_23, %c78] : memref<1x4x612xf32, #tpu.memory_space<vmem>>, vector<1x4x526xf32>
    %42 = vector.shape_cast %41 : vector<1x4x526xf32> to vector<4x526xf32>
    %43 = tpu.concatenate %26, %28, %30, %32, %34, %36, %38, %40, %42 in 0 : vector<4x526xf32>, vector<4x526xf32>, vector<4x526xf32>, vector<4x526xf32>, vector<4x526xf32>, vector<4x526xf32>, vector<4x526xf32>, vector<4x526xf32>, vector<4x526xf32> -> vector<36x526xf32>
    %c0_24 = arith.constant 0 : index
    %c0_25 = arith.constant 0 : index
    %44 = vector.load %arg2[%c0_24, %c0_25] : memref<4x36xf32, #tpu.memory_space<vmem>>, vector<4x36xf32>
    %cst_26 = arith.constant dense<0.000000e+00> : vector<4x526xf32>
    %45 = tpu.matmul %44, %43, %cst_26 {dimension_numbers = #tpu.dot_dimension_numbers<[1], [0], [0], [1], [0, 0, 1, 1], [], []>} : vector<4x36xf32>, vector<36x526xf32>, vector<4x526xf32> -> vector<4x526xf32>
    %c0_27 = arith.constant 0 : index
    %c0_28 = arith.constant 0 : index
    %46 = vector.load %arg3[%c0_27, %c0_28] : memref<4x1xf32, #tpu.memory_space<vmem>>, vector<4x1xf32>
    %47 = vector.broadcast %46 : vector<4x1xf32> to vector<4x526xf32>
    %48 = arith.addf %45, %47 : vector<4x526xf32>
    %cst_29 = arith.constant 0.000000e+00 : f32
    %49 = vector.broadcast %cst_29 : f32 to vector<4x526xf32>
    %50 = arith.cmpf ogt, %48, %49 : vector<4x526xf32>
    %cst_30 = arith.constant 3.000000e-01 : f32
    %51 = vector.broadcast %cst_30 : f32 to vector<4x526xf32>
    %52 = arith.mulf %51, %48 : vector<4x526xf32>
    %53 = arith.select %50, %48, %52 : vector<4x526xi1>, vector<4x526xf32>
    %54 = vector.broadcast %20 : vector<1x526xf32> to vector<4x526xf32>
    %55 = arith.mulf %53, %54 : vector<4x526xf32>
    %c0_31 = arith.constant 0 : index
    %c43_32 = arith.constant 43 : index
    %56 = vector.load %arg13[%c0_31, %c43_32] : memref<4x612xf32, #tpu.memory_space<vmem>>, vector<4x526xf32>
    tpu.vector_store %arg13[%c0_31, %c43_32], %55 {strides = array<i32>} : memref<4x612xf32, #tpu.memory_space<vmem>>, vector<4x526xf32>,
    %c0_33 = arith.constant 0 : index
    %c6 = arith.constant 6 : index
    %57 = vector.load %arg13[%c0_33, %c6] : memref<4x612xf32, #tpu.memory_space<vmem>>, vector<4x526xf32>
    %c0_34 = arith.constant 0 : index
    %c9_35 = arith.constant 9 : index
    %58 = vector.load %arg13[%c0_34, %c9_35] : memref<4x612xf32, #tpu.memory_space<vmem>>, vector<4x526xf32>
    %c0_36 = arith.constant 0 : index
    %c12 = arith.constant 12 : index
    %59 = vector.load %arg13[%c0_36, %c12] : memref<4x612xf32, #tpu.memory_space<vmem>>, vector<4x526xf32>
    %c0_37 = arith.constant 0 : index
    %c40 = arith.constant 40 : index
    %60 = vector.load %arg13[%c0_37, %c40] : memref<4x612xf32, #tpu.memory_space<vmem>>, vector<4x526xf32>
    %c0_38 = arith.constant 0 : index
    %c43_39 = arith.constant 43 : index
    %61 = vector.load %arg13[%c0_38, %c43_39] : memref<4x612xf32, #tpu.memory_space<vmem>>, vector<4x526xf32>
    %c0_40 = arith.constant 0 : index
    %c46 = arith.constant 46 : index
    %62 = vector.load %arg13[%c0_40, %c46] : memref<4x612xf32, #tpu.memory_space<vmem>>, vector<4x526xf32>
    %c0_41 = arith.constant 0 : index
    %c74 = arith.constant 74 : index
    %63 = vector.load %arg13[%c0_41, %c74] : memref<4x612xf32, #tpu.memory_space<vmem>>, vector<4x526xf32>
    %c0_42 = arith.constant 0 : index
    %c77_43 = arith.constant 77 : index
    %64 = vector.load %arg13[%c0_42, %c77_43] : memref<4x612xf32, #tpu.memory_space<vmem>>, vector<4x526xf32>
    %c0_44 = arith.constant 0 : index
    %c80 = arith.constant 80 : index
    %65 = vector.load %arg13[%c0_44, %c80] : memref<4x612xf32, #tpu.memory_space<vmem>>, vector<4x526xf32>
    %66 = tpu.concatenate %57, %58, %59, %60, %61, %62, %63, %64, %65 in 0 : vector<4x526xf32>, vector<4x526xf32>, vector<4x526xf32>, vector<4x526xf32>, vector<4x526xf32>, vector<4x526xf32>, vector<4x526xf32>, vector<4x526xf32>, vector<4x526xf32> -> vector<36x526xf32>
    %c0_45 = arith.constant 0 : index
    %c0_46 = arith.constant 0 : index
    %67 = vector.load %arg4[%c0_45, %c0_46] : memref<4x36xf32, #tpu.memory_space<vmem>>, vector<4x36xf32>
    %cst_47 = arith.constant dense<0.000000e+00> : vector<4x526xf32>
    %68 = tpu.matmul %67, %66, %cst_47 {dimension_numbers = #tpu.dot_dimension_numbers<[1], [0], [0], [1], [0, 0, 1, 1], [], []>} : vector<4x36xf32>, vector<36x526xf32>, vector<4x526xf32> -> vector<4x526xf32>
    %c0_48 = arith.constant 0 : index
    %c0_49 = arith.constant 0 : index
    %69 = vector.load %arg5[%c0_48, %c0_49] : memref<4x1xf32, #tpu.memory_space<vmem>>, vector<4x1xf32>
    %70 = vector.broadcast %69 : vector<4x1xf32> to vector<4x526xf32>
    %71 = arith.addf %68, %70 : vector<4x526xf32>
    %cst_50 = arith.constant 0.000000e+00 : f32
    %72 = vector.broadcast %cst_50 : f32 to vector<4x526xf32>
    %73 = arith.cmpf ogt, %71, %72 : vector<4x526xf32>
    %cst_51 = arith.constant 3.000000e-01 : f32
    %74 = vector.broadcast %cst_51 : f32 to vector<4x526xf32>
    %75 = arith.mulf %74, %71 : vector<4x526xf32>
    %76 = arith.select %73, %71, %75 : vector<4x526xi1>, vector<4x526xf32>
    %77 = vector.broadcast %20 : vector<1x526xf32> to vector<4x526xf32>
    %78 = arith.mulf %76, %77 : vector<4x526xf32>
    %c0_52 = arith.constant 0 : index
    %c43_53 = arith.constant 43 : index
    %79 = vector.load %arg13[%c0_52, %c43_53] : memref<4x612xf32, #tpu.memory_space<vmem>>, vector<4x526xf32>
    tpu.vector_store %arg13[%c0_52, %c43_53], %78 {strides = array<i32>} : memref<4x612xf32, #tpu.memory_space<vmem>>, vector<4x526xf32>,
    %c0_54 = arith.constant 0 : index
    %c0_55 = arith.constant 0 : index
    %80 = vector.load %arg13[%c0_54, %c0_55] : memref<4x612xf32, #tpu.memory_space<vmem>>, vector<4x526xf32>
    %c0_56 = arith.constant 0 : index
    %c9_57 = arith.constant 9 : index
    %81 = vector.load %arg13[%c0_56, %c9_57] : memref<4x612xf32, #tpu.memory_space<vmem>>, vector<4x526xf32>
    %c0_58 = arith.constant 0 : index
    %c18 = arith.constant 18 : index
    %82 = vector.load %arg13[%c0_58, %c18] : memref<4x612xf32, #tpu.memory_space<vmem>>, vector<4x526xf32>
    %c0_59 = arith.constant 0 : index
    %c34 = arith.constant 34 : index
    %83 = vector.load %arg13[%c0_59, %c34] : memref<4x612xf32, #tpu.memory_space<vmem>>, vector<4x526xf32>
    %c0_60 = arith.constant 0 : index
    %c43_61 = arith.constant 43 : index
    %84 = vector.load %arg13[%c0_60, %c43_61] : memref<4x612xf32, #tpu.memory_space<vmem>>, vector<4x526xf32>
    %c0_62 = arith.constant 0 : index
    %c52 = arith.constant 52 : index
    %85 = vector.load %arg13[%c0_62, %c52] : memref<4x612xf32, #tpu.memory_space<vmem>>, vector<4x526xf32>
    %c0_63 = arith.constant 0 : index
    %c68 = arith.constant 68 : index
    %86 = vector.load %arg13[%c0_63, %c68] : memref<4x612xf32, #tpu.memory_space<vmem>>, vector<4x526xf32>
    %c0_64 = arith.constant 0 : index
    %c77_65 = arith.constant 77 : index
    %87 = vector.load %arg13[%c0_64, %c77_65] : memref<4x612xf32, #tpu.memory_space<vmem>>, vector<4x526xf32>
    %c0_66 = arith.constant 0 : index
    %c86 = arith.constant 86 : index
    %88 = vector.load %arg13[%c0_66, %c86] : memref<4x612xf32, #tpu.memory_space<vmem>>, vector<4x526xf32>
    %89 = tpu.concatenate %80, %81, %82, %83, %84, %85, %86, %87, %88 in 0 : vector<4x526xf32>, vector<4x526xf32>, vector<4x526xf32>, vector<4x526xf32>, vector<4x526xf32>, vector<4x526xf32>, vector<4x526xf32>, vector<4x526xf32>, vector<4x526xf32> -> vector<36x526xf32>
    %c0_67 = arith.constant 0 : index
    %c0_68 = arith.constant 0 : index
    %90 = vector.load %arg6[%c0_67, %c0_68] : memref<4x36xf32, #tpu.memory_space<vmem>>, vector<4x36xf32>
    %cst_69 = arith.constant dense<0.000000e+00> : vector<4x526xf32>
    %91 = tpu.matmul %90, %89, %cst_69 {dimension_numbers = #tpu.dot_dimension_numbers<[1], [0], [0], [1], [0, 0, 1, 1], [], []>} : vector<4x36xf32>, vector<36x526xf32>, vector<4x526xf32> -> vector<4x526xf32>
    %c0_70 = arith.constant 0 : index
    %c0_71 = arith.constant 0 : index
    %92 = vector.load %arg7[%c0_70, %c0_71] : memref<4x1xf32, #tpu.memory_space<vmem>>, vector<4x1xf32>
    %93 = vector.broadcast %92 : vector<4x1xf32> to vector<4x526xf32>
    %94 = arith.addf %91, %93 : vector<4x526xf32>
    %cst_72 = arith.constant 0.000000e+00 : f32
    %95 = vector.broadcast %cst_72 : f32 to vector<4x526xf32>
    %96 = arith.cmpf ogt, %94, %95 : vector<4x526xf32>
    %cst_73 = arith.constant 3.000000e-01 : f32
    %97 = vector.broadcast %cst_73 : f32 to vector<4x526xf32>
    %98 = arith.mulf %97, %94 : vector<4x526xf32>
    %99 = arith.select %96, %94, %98 : vector<4x526xi1>, vector<4x526xf32>
    %100 = vector.broadcast %20 : vector<1x526xf32> to vector<4x526xf32>
    %101 = arith.mulf %99, %100 : vector<4x526xf32>
    %c0_74 = arith.constant 0 : index
    %c43_75 = arith.constant 43 : index
    %102 = vector.load %arg13[%c0_74, %c43_75] : memref<4x612xf32, #tpu.memory_space<vmem>>, vector<4x526xf32>
    tpu.vector_store %arg13[%c0_74, %c43_75], %101 {strides = array<i32>} : memref<4x612xf32, #tpu.memory_space<vmem>>, vector<4x526xf32>,
    %c0_76 = arith.constant 0 : index
    %c8_77 = arith.constant 8 : index
    %103 = vector.load %arg13[%c0_76, %c8_77] : memref<4x612xf32, #tpu.memory_space<vmem>>, vector<4x526xf32>
    %c0_78 = arith.constant 0 : index
    %c9_79 = arith.constant 9 : index
    %104 = vector.load %arg13[%c0_78, %c9_79] : memref<4x612xf32, #tpu.memory_space<vmem>>, vector<4x526xf32>
    %c0_80 = arith.constant 0 : index
    %c10_81 = arith.constant 10 : index
    %105 = vector.load %arg13[%c0_80, %c10_81] : memref<4x612xf32, #tpu.memory_space<vmem>>, vector<4x526xf32>
    %c0_82 = arith.constant 0 : index
    %c42_83 = arith.constant 42 : index
    %106 = vector.load %arg13[%c0_82, %c42_83] : memref<4x612xf32, #tpu.memory_space<vmem>>, vector<4x526xf32>
    %c0_84 = arith.constant 0 : index
    %c43_85 = arith.constant 43 : index
    %107 = vector.load %arg13[%c0_84, %c43_85] : memref<4x612xf32, #tpu.memory_space<vmem>>, vector<4x526xf32>
    %c0_86 = arith.constant 0 : index
    %c44_87 = arith.constant 44 : index
    %108 = vector.load %arg13[%c0_86, %c44_87] : memref<4x612xf32, #tpu.memory_space<vmem>>, vector<4x526xf32>
    %c0_88 = arith.constant 0 : index
    %c76_89 = arith.constant 76 : index
    %109 = vector.load %arg13[%c0_88, %c76_89] : memref<4x612xf32, #tpu.memory_space<vmem>>, vector<4x526xf32>
    %c0_90 = arith.constant 0 : index
    %c77_91 = arith.constant 77 : index
    %110 = vector.load %arg13[%c0_90, %c77_91] : memref<4x612xf32, #tpu.memory_space<vmem>>, vector<4x526xf32>
    %c0_92 = arith.constant 0 : index
    %c78_93 = arith.constant 78 : index
    %111 = vector.load %arg13[%c0_92, %c78_93] : memref<4x612xf32, #tpu.memory_space<vmem>>, vector<4x526xf32>
    %112 = tpu.concatenate %103, %104, %105, %106, %107, %108, %109, %110, %111 in 0 : vector<4x526xf32>, vector<4x526xf32>, vector<4x526xf32>, vector<4x526xf32>, vector<4x526xf32>, vector<4x526xf32>, vector<4x526xf32>, vector<4x526xf32>, vector<4x526xf32> -> vector<36x526xf32>
    %c0_94 = arith.constant 0 : index
    %c0_95 = arith.constant 0 : index
    %113 = vector.load %arg8[%c0_94, %c0_95] : memref<8x36xf32, #tpu.memory_space<vmem>>, vector<8x36xf32>
    %cst_96 = arith.constant dense<0.000000e+00> : vector<8x526xf32>
    %114 = tpu.matmul %113, %112, %cst_96 {dimension_numbers = #tpu.dot_dimension_numbers<[1], [0], [0], [1], [0, 0, 1, 1], [], []>} : vector<8x36xf32>, vector<36x526xf32>, vector<8x526xf32> -> vector<8x526xf32>
    %c0_97 = arith.constant 0 : index
    %c0_98 = arith.constant 0 : index
    %115 = vector.load %arg9[%c0_97, %c0_98] : memref<8x1xf32, #tpu.memory_space<vmem>>, vector<8x1xf32>
    %116 = vector.broadcast %115 : vector<8x1xf32> to vector<8x526xf32>
    %117 = arith.addf %114, %116 : vector<8x526xf32>
    %c0_99 = arith.constant 0 : index
    %c0_100 = arith.constant 0 : index
    %118 = vector.load %arg10[%c0_99, %c0_100] : memref<8x4xf32, #tpu.memory_space<vmem>>, vector<8x4xf32>
    %c0_101 = arith.constant 0 : index
    %c0_102 = arith.constant 0 : index
    %c43_103 = arith.constant 43 : index
    %119 = vector.load %arg1[%c0_101, %c0_102, %c43_103] : memref<1x4x612xf32, #tpu.memory_space<vmem>>, vector<1x4x526xf32>
    %120 = vector.shape_cast %119 : vector<1x4x526xf32> to vector<4x526xf32>
    %cst_104 = arith.constant dense<0.000000e+00> : vector<8x526xf32>
    %121 = tpu.matmul %118, %120, %cst_104 {dimension_numbers = #tpu.dot_dimension_numbers<[1], [0], [0], [1], [0, 0, 1, 1], [], []>} : vector<8x4xf32>, vector<4x526xf32>, vector<8x526xf32> -> vector<8x526xf32>
    %122 = arith.addf %117, %121 : vector<8x526xf32>
    %c0_105 = arith.constant 0 : index
    %c0_106 = arith.constant 0 : index
    %123 = vector.load %arg11[%c0_105, %c0_106] : memref<8x1xf32, #tpu.memory_space<vmem>>, vector<8x1xf32>
    %124 = vector.broadcast %123 : vector<8x1xf32> to vector<8x526xf32>
    %125 = arith.addf %122, %124 : vector<8x526xf32>
    %126 = tpu.iota {dimensions = array<i32: 0>} : vector<16x8xi32>
    %127 = tpu.iota {dimensions = array<i32: 1>} : vector<16x8xi32>
    %c2_i32 = arith.constant 2 : i32
    %128 = vector.broadcast %c2_i32 : i32 to vector<16x8xi32>
    %129 = arith.muli %128, %127 : vector<16x8xi32>
    %130 = arith.cmpi eq, %126, %129 : vector<16x8xi32>
    %131 = arith.extui %130 : vector<16x8xi1> to vector<16x8xi32>
    %132 = arith.sitofp %131 : vector<16x8xi32> to vector<16x8xf32>
    %133 = vector.extract_strided_slice %125 {offsets = [0, 0], sizes = [8, 16], strides = [1, 1]} : vector<8x526xf32> to vector<8x16xf32>
    %cst_107 = arith.constant dense<0.000000e+00> : vector<8x8xf32>
    %134 = tpu.matmul %133, %132, %cst_107 {dimension_numbers = #tpu.dot_dimension_numbers<[1], [0], [0], [1], [0, 0, 1, 1], [], []>} : vector<8x16xf32>, vector<16x8xf32>, vector<8x8xf32> -> vector<8x8xf32>
    %135 = vector.extract_strided_slice %125 {offsets = [0, 68], sizes = [8, 16], strides = [1, 1]} : vector<8x526xf32> to vector<8x16xf32>
    %cst_108 = arith.constant dense<0.000000e+00> : vector<8x8xf32>
    %136 = tpu.matmul %135, %132, %cst_108 {dimension_numbers = #tpu.dot_dimension_numbers<[1], [0], [0], [1], [0, 0, 1, 1], [], []>} : vector<8x16xf32>, vector<16x8xf32>, vector<8x8xf32> -> vector<8x8xf32>
    %137 = vector.extract_strided_slice %125 {offsets = [0, 136], sizes = [8, 16], strides = [1, 1]} : vector<8x526xf32> to vector<8x16xf32>
    %cst_109 = arith.constant dense<0.000000e+00> : vector<8x8xf32>
    %138 = tpu.matmul %137, %132, %cst_109 {dimension_numbers = #tpu.dot_dimension_numbers<[1], [0], [0], [1], [0, 0, 1, 1], [], []>} : vector<8x16xf32>, vector<16x8xf32>, vector<8x8xf32> -> vector<8x8xf32>
    %139 = vector.extract_strided_slice %125 {offsets = [0, 204], sizes = [8, 16], strides = [1, 1]} : vector<8x526xf32> to vector<8x16xf32>
    %cst_110 = arith.constant dense<0.000000e+00> : vector<8x8xf32>
    %140 = tpu.matmul %139, %132, %cst_110 {dimension_numbers = #tpu.dot_dimension_numbers<[1], [0], [0], [1], [0, 0, 1, 1], [], []>} : vector<8x16xf32>, vector<16x8xf32>, vector<8x8xf32> -> vector<8x8xf32>
    %141 = vector.extract_strided_slice %125 {offsets = [0, 272], sizes = [8, 16], strides = [1, 1]} : vector<8x526xf32> to vector<8x16xf32>
    %cst_111 = arith.constant dense<0.000000e+00> : vector<8x8xf32>
    %142 = tpu.matmul %141, %132, %cst_111 {dimension_numbers = #tpu.dot_dimension_numbers<[1], [0], [0], [1], [0, 0, 1, 1], [], []>} : vector<8x16xf32>, vector<16x8xf32>, vector<8x8xf32> -> vector<8x8xf32>
    %143 = vector.extract_strided_slice %125 {offsets = [0, 340], sizes = [8, 16], strides = [1, 1]} : vector<8x526xf32> to vector<8x16xf32>
    %cst_112 = arith.constant dense<0.000000e+00> : vector<8x8xf32>
    %144 = tpu.matmul %143, %132, %cst_112 {dimension_numbers = #tpu.dot_dimension_numbers<[1], [0], [0], [1], [0, 0, 1, 1], [], []>} : vector<8x16xf32>, vector<16x8xf32>, vector<8x8xf32> -> vector<8x8xf32>
    %145 = vector.extract_strided_slice %125 {offsets = [0, 408], sizes = [8, 16], strides = [1, 1]} : vector<8x526xf32> to vector<8x16xf32>
    %cst_113 = arith.constant dense<0.000000e+00> : vector<8x8xf32>
    %146 = tpu.matmul %145, %132, %cst_113 {dimension_numbers = #tpu.dot_dimension_numbers<[1], [0], [0], [1], [0, 0, 1, 1], [], []>} : vector<8x16xf32>, vector<16x8xf32>, vector<8x8xf32> -> vector<8x8xf32>
    %147 = vector.extract_strided_slice %125 {offsets = [0, 476], sizes = [8, 16], strides = [1, 1]} : vector<8x526xf32> to vector<8x16xf32>
    %cst_114 = arith.constant dense<0.000000e+00> : vector<8x8xf32>
    %148 = tpu.matmul %147, %132, %cst_114 {dimension_numbers = #tpu.dot_dimension_numbers<[1], [0], [0], [1], [0, 0, 1, 1], [], []>} : vector<8x16xf32>, vector<16x8xf32>, vector<8x8xf32> -> vector<8x8xf32>
    %149 = tpu.concatenate %134, %136, %138, %140, %142, %144, %146, %148 in 1 : vector<8x8xf32>, vector<8x8xf32>, vector<8x8xf32>, vector<8x8xf32>, vector<8x8xf32>, vector<8x8xf32>, vector<8x8xf32>, vector<8x8xf32> -> vector<8x64xf32>
    %c0_115 = arith.constant 0 : index
    %c0_116 = arith.constant 0 : index
    %c0_117 = arith.constant 0 : index
    %150 = vector.load %arg12[%c0_115, %c0_116, %c0_117] : memref<1x8x64xf32, #tpu.memory_space<vmem>>, vector<1x8x64xf32>
    %151 = vector.shape_cast %150 : vector<1x8x64xf32> to vector<8x64xf32>
    %152 = vector.shape_cast %149 : vector<8x64xf32> to vector<1x8x64xf32>
    tpu.vector_store %arg12[%c0_115, %c0_116, %c0_117], %152 {strides = array<i32>} : memref<1x8x64xf32, #tpu.memory_space<vmem>>, vector<1x8x64xf32>,
    return
  }
  func.func @transform_0(%arg0: i32) -> (i32, i32, i32) {
    %c0_i32 = arith.constant 0 : i32
    %c0_i32_0 = arith.constant 0 : i32
    %c0_i32_1 = arith.constant 0 : i32
    return %arg0, %c0_i32, %c0_i32_0 : i32, i32, i32
  }
  func.func @transform_1(%arg0: i32) -> (i32, i32) {
    %c0_i32 = arith.constant 0 : i32
    %c0_i32_0 = arith.constant 0 : i32
    %c0_i32_1 = arith.constant 0 : i32
    return %c0_i32, %c0_i32_0 : i32, i32
  }
  func.func @transform_2(%arg0: i32) -> (i32, i32) {
    %c0_i32 = arith.constant 0 : i32
    %c0_i32_0 = arith.constant 0 : i32
    %c0_i32_1 = arith.constant 0 : i32
    return %c0_i32, %c0_i32_0 : i32, i32
  }
  func.func @transform_3(%arg0: i32) -> (i32, i32) {
    %c0_i32 = arith.constant 0 : i32
    %c0_i32_0 = arith.constant 0 : i32
    %c0_i32_1 = arith.constant 0 : i32
    return %c0_i32, %c0_i32_0 : i32, i32
  }
  func.func @transform_4(%arg0: i32) -> (i32, i32) {
    %c0_i32 = arith.constant 0 : i32
    %c0_i32_0 = arith.constant 0 : i32
    %c0_i32_1 = arith.constant 0 : i32
    return %c0_i32, %c0_i32_0 : i32, i32
  }
  func.func @transform_5(%arg0: i32) -> (i32, i32) {
    %c0_i32 = arith.constant 0 : i32
    %c0_i32_0 = arith.constant 0 : i32
    %c0_i32_1 = arith.constant 0 : i32
    return %c0_i32, %c0_i32_0 : i32, i32
  }
  func.func @transform_6(%arg0: i32) -> (i32, i32) {
    %c0_i32 = arith.constant 0 : i32
    %c0_i32_0 = arith.constant 0 : i32
    %c0_i32_1 = arith.constant 0 : i32
    return %c0_i32, %c0_i32_0 : i32, i32
  }
  func.func @transform_7(%arg0: i32) -> (i32, i32) {
    %c0_i32 = arith.constant 0 : i32
    %c0_i32_0 = arith.constant 0 : i32
    %c0_i32_1 = arith.constant 0 : i32
    return %c0_i32, %c0_i32_0 : i32, i32
  }
  func.func @transform_8(%arg0: i32) -> (i32, i32) {
    %c0_i32 = arith.constant 0 : i32
    %c0_i32_0 = arith.constant 0 : i32
    %c0_i32_1 = arith.constant 0 : i32
    return %c0_i32, %c0_i32_0 : i32, i32
  }
  func.func @transform_9(%arg0: i32) -> (i32, i32) {
    %c0_i32 = arith.constant 0 : i32
    %c0_i32_0 = arith.constant 0 : i32
    %c0_i32_1 = arith.constant 0 : i32
    return %c0_i32, %c0_i32_0 : i32, i32
  }
  func.func @transform_10(%arg0: i32) -> (i32, i32) {
    %c0_i32 = arith.constant 0 : i32
    %c0_i32_0 = arith.constant 0 : i32
    %c0_i32_1 = arith.constant 0 : i32
    return %c0_i32, %c0_i32_0 : i32, i32
  }
  func.func @transform_11(%arg0: i32) -> (i32, i32, i32) {
    %c0_i32 = arith.constant 0 : i32
    %c0_i32_0 = arith.constant 0 : i32
    %c0_i32_1 = arith.constant 0 : i32
    return %arg0, %c0_i32, %c0_i32_0 : i32, i32, i32
  }
}

</mosaic_0001>

<bundles_post_ra>
// kernel: eblock_forward.1
= control target key start
LH: loop header
LB: loop body
LE: loop exit
PB: predicated region body
PF: predicated region fallthrough
CT: control target
= control target key end

     0   :  { %s3839_s17 = smov 0   ;;  %s5105_s0 = inlined_call_operand.vmem [shape: f32[2,4,612], index: 0, kind: input, shape index: {}]   ;;  %s5106_s1 = inlined_call_operand.vmem [shape: f32[4,36], index: 1, kind: input, shape index: {}]   ;;  %s5107_s2 = inlined_call_operand.vmem [shape: f32[4,1], index: 2, kind: input, shape index: {}]   ;;  %s5108_s3 = inlined_call_operand.vmem [shape: f32[4,36], index: 3, kind: input, shape index: {}]   ;;  %s5109_s4 = inlined_call_operand.vmem [shape: f32[4,1], index: 4, kind: input, shape index: {}]   ;;  %s5110_s5 = inlined_call_operand.vmem [shape: f32[4,36], index: 5, kind: input, shape index: {}]   ;;  %s5111_s6 = inlined_call_operand.vmem [shape: f32[4,1], index: 6, kind: input, shape index: {}]   ;;  %s5112_s7 = inlined_call_operand.vmem [shape: f32[8,36], index: 7, kind: input, shape index: {}]   ;;  %s5113_s8 = inlined_call_operand.vmem [shape: f32[8,1], index: 8, kind: input, shape index: {}]   ;;  %s5114_s9 = inlined_call_operand.vmem [shape: f32[8,4], index: 9, kind: input, shape index: {}]   ;;  %s5115_s10 = inlined_call_operand.vmem [shape: f32[8,1], index: 10, kind: input, shape index: {}]   ;;  %s5116_s11 = inlined_call_operand.vmem [shape: f32[2,8,64], index: 11, kind: output, shape index: {}]  }
   0x1 LB: > { %s3447_s18 = sadd.s32 4294967295, %s3739_s17   ;;  %p3451_p0 = scmp.ge.s32.totalorder %s3739_s17, 1  ;;  %s3739_s17 = sphi %s3839_s17, %s21_s17  }
   0x2   : > { %p337_p1 = scmp.lt.s32.totalorder %s3739_s17, 3 }
   0x4   : > { %p338_p2 = pnand %p3451_p0, %p337_p1 }
   0x5   : > { %p376_p3 = scmp.lt.s32.totalorder (!%p338_p2), %s3447_s18, 1  ;;  %s3741_s23 = smov (!%p338_p2), 58  }
   0x6   : > { %341 = sbr.rel (%p338_p2) target bundleno = 2818 (0xb02), region = 64  ;;  %s3742_s24 = smov (!%p338_p2), 60  }
   0x7   : > { %s3743_s25 = smov (!%p338_p2), 59   ;;  %s3744_s26 = smov (!%p338_p2), 93  }
   0x8   : > { %s3745_s27 = smov (!%p338_p2), 92   ;;  %s3746_s28 = smov (!%p338_p2), 126  }
   0x9   : > { %s3747_s29 = smov (!%p338_p2), 94   ;;  %s3748_s30 = smov (!%p338_p2), 127  }
   0xa   : > { %s3749_s12 = smov (!%p338_p2), 120   ;;  %s3754_s20 = smov (!%p338_p2), 54  }
   0xb   : > { %s5182_s18 = smov (!%p376_p3, %s3447_s18), 1  ;;  %vm5123_vm0 = vcmask 474112   ;;  %vm658_vm1 = vcmask 1043456   ;;  %vm5122_vm2 = vcmask 482304   ;;  %vm613_vm3 = vcmask 490496   ;;  %s3755_s21 = smov 57  }
   0xc   : > { %s3660_s19 = smul.u32 20, %s5182_s18  ;;  %vm5120_vm4 = vcmask 752640   ;;  %vm5121_vm5 = vcmask 760832   ;;  %vm553_vm6 = vcmask 769024   ;;  %vm5119_vm7 = vcmask 1031168   ;;  %s3756_s13 = smov 91  }
   0xd   : > { %vm5118_vm8 = vcmask 1039360   ;;  %vm5117_vm9 = vcmask 982016   ;;  %vm797_vm10 = vcmask 293888   ;;  %vm3752_vm11 = vmmov 0   ;;  %s3757_s14 = smov 122   ;;  %s3758_s15 = smov 88  }
   0xe   : > { %s3853_s22 = scalar_lea.vmem %s5105_s0, %s3660_s19  ;;  %s3753_s19 = smov 43  }
   0xf   : > { %v3856_v0 = vld [vmem:[%s3853_s22 + $0x10] sm:$0xf]  ;;  %v3859_v1 = vld [vmem:[%s3853_s22] sm:$0xff]  ;;  %v3862_v2 = vld [vmem:[%s3853_s22 + $0x8] sm:$0xff]  ;;  %s3759_s16 = smov 125  }
  0x10   : > { %651 = vrot.lane.b32.xlu1 %v3856_v0, %s3741_s23  ;;  %647 = vrot.lane.b32.xlu0 %v3862_v2, %s3741_s23  ;;  %v3870_v3 = vcombine.high %v3859_v1, %v3859_v1  ;;  %v3878_v4 = vcombine.high %v3862_v2, %v3862_v2  ;;  %v501_v5 = vcombine.low %v3862_v2, %v3862_v2 }
  0x11   : > { %v502_v6 = vcombine.low %v3856_v0, %v3856_v0  ;;  %v500_v7 = vcombine.low %v3859_v1, %v3859_v1 }
  0x14   : > { %607 = vrot.lane.b32.xlu1 %v3862_v2, %s3742_s24  ;;  %645 = vrot.lane.b32.xlu0 %v3870_v3, %s3741_s23 }
  0x18   : > { %649 = vrot.lane.b32.xlu1 %v3878_v4, %s3741_s23  ;;  %605 = vrot.lane.b32.xlu0 %v3870_v3, %s3742_s24 }
  0x1c   : > { %611 = vrot.lane.b32.xlu1 %v3856_v0, %s3742_s24  ;;  %609 = vrot.lane.b32.xlu0 %v3878_v4, %s3742_s24 }
  0x20   : > { %627 = vrot.lane.b32.xlu1 %v501_v5, %s3743_s25  ;;  %625 = vrot.lane.b32.xlu0 %v3859_v1, %s3743_s25 }
  0x24   : > { %631 = vrot.lane.b32.xlu1 %v502_v6, %s3743_s25  ;;  %629 = vrot.lane.b32.xlu0 %v3862_v2, %s3743_s25 }
  0x28   : > { %603 = vrot.lane.b32.xlu1 %v3859_v1, %s3742_s24  ;;  %643 = vrot.lane.b32.xlu0 %v3859_v1, %s3741_s23 }
  0x2c   : > { %565 = vrot.lane.b32.xlu1 %v3870_v3, %s3744_s26  ;;  %623 = vrot.lane.b32.xlu0 %v500_v7, %s3743_s25 }
  0x30   : > { %569 = vrot.lane.b32.xlu1 %v3878_v4, %s3744_s26  ;;  %567 = vrot.lane.b32.xlu0 %v3862_v2, %s3744_s26 }
  0x34   : > { %585 = vrot.lane.b32.xlu1 %v3859_v1, %s3745_s27  ;;  %571 = vrot.lane.b32.xlu0 %v3856_v0, %s3744_s26 }
  0x38   : > { %589 = vrot.lane.b32.xlu1 %v3862_v2, %s3745_s27  ;;  %587 = vrot.lane.b32.xlu0 %v501_v5, %s3745_s27 }
  0x3c   : > { %563 = vrot.lane.b32.xlu1 %v3859_v1, %s3744_s26  ;;  %591 = vrot.lane.b32.xlu0 %v502_v6, %s3745_s27 }
  0x40   : > { %525 = vrot.lane.b32.xlu1 %v3870_v3, %s3746_s28  ;;  %583 = vrot.lane.b32.xlu0 %v500_v7, %s3745_s27 }
  0x44   : > { %529 = vrot.lane.b32.xlu1 %v3878_v4, %s3746_s28  ;;  %527 = vrot.lane.b32.xlu0 %v3862_v2, %s3746_s28 }
  0x48   : > { %545 = vrot.lane.b32.xlu1 %v3859_v1, %s3747_s29  ;;  %531 = vrot.lane.b32.xlu0 %v3856_v0, %s3746_s28 }
  0x4c   : > { %549 = vrot.lane.b32.xlu1 %v3862_v2, %s3747_s29  ;;  %547 = vrot.lane.b32.xlu0 %v501_v5, %s3747_s29 }
  0x50   : > { %551 = vrot.lane.b32.xlu0 %v502_v6, %s3747_s29  ;;  %523 = vrot.lane.b32.xlu1 %v3859_v1, %s3746_s28 }
  0x54   : > { %543 = vrot.lane.b32.xlu0 %v500_v7, %s3747_s29  ;;  %505 = vrot.lane.b32.xlu1 %v3859_v1, %s3748_s30 }
  0x58   : > { %509 = vrot.lane.b32.xlu1 %v3862_v2, %s3748_s30  ;;  %507 = vrot.lane.b32.xlu0 %v501_v5, %s3748_s30 }
  0x5c   : > { %503 = vrot.lane.b32.xlu1 %v500_v7, %s3748_s30  ;;  %511 = vrot.lane.b32.xlu0 %v502_v6, %s3748_s30 }
  0x82   : > { %v652_v8 = vpop.permute.xlu1 %651  ;;  %v648_v9 = vpop.permute.xlu0 %647 }
  0x83   : > { %754 = vrot.lane.b32.xlu1 %v652_v8, %s3749_s12 }
  0x86   : > { %v3947_v10 = vpop.permute.xlu1 %607  ;;  %v646_v11 = vpop.permute.xlu0 %645 }
  0x87   : > { %v655_v12 = vsel %vm5123_vm0, %v646_v11, %v648_v9 }
  0x88   : > { %748 = vrot.lane.b32.xlu0 %v655_v12, %s3749_s12 }
  0x8a   : > { %v650_v13 = vpop.permute.xlu1 %649  ;;  %v606_v14 = vpop.permute.xlu0 %605 }
  0x8b   : > { %v656_v15 = vsel %vm5123_vm0, %v648_v9, %v650_v13  ;;  %v657_v16 = vsel %vm5123_vm0, %v650_v13, %v652_v8  ;;  %v615_v39 = vsel %vm613_vm3, %v606_v14, %v3947_v10 }
  0x8c   : > { %750 = vrot.lane.b32.xlu1 %v656_v15, %s3749_s12  ;;  %752 = vrot.lane.b32.xlu0 %v657_v16, %s3749_s12 }
  0x8e   : > { %v612_v17 = vpop.permute.xlu1 %611  ;;  %v3955_v18 = vpop.permute.xlu0 %609 }
  0x8f   : > { %v617_v44 = vsel %vm613_vm3, %v3955_v18, %v612_v17  ;;  %v616_v7 = vsel %vm613_vm3, %v3947_v10, %v3955_v18 }
  0x92   : > { %v628_v19 = vpop.permute.xlu1 %627  ;;  %v626_v20 = vpop.permute.xlu0 %625 }
  0x93   : > { %v635_v38 = vsel %vm5122_vm2, %v626_v20, %v628_v19 }
  0x94   : > { %v675_v42 = vsel %vm658_vm1, %v615_v39, %v635_v38 }
  0x96   : > { %v632_v21 = vpop.permute.xlu1 %631  ;;  %v630_v22 = vpop.permute.xlu0 %629 }
  0x97   : > { %v678_v26 = vsel %vm658_vm1, %v612_v17, %v632_v21  ;;  %v637_v43 = vsel %vm5122_vm2, %v630_v22, %v632_v21  ;;  %v636_v5 = vsel %vm5122_vm2, %v628_v19, %v630_v22 }
  0x98   : > { %v677_v47 = vsel %vm658_vm1, %v617_v44, %v637_v43  ;;  %v676_v12 = vsel %vm658_vm1, %v616_v7, %v636_v5 }
  0x9a   : > { %v604_v23 = vpop.permute.xlu1 %603  ;;  %v644_v24 = vpop.permute.xlu0 %643 }
  0x9b   : > { %v654_v25 = vsel %vm5123_vm0, %v644_v24, %v646_v11  ;;  %v614_v49 = vsel %vm613_vm3, %v604_v23, %v606_v14 }
  0x9c   : > { %746 = vrot.lane.b32.xlu0 %v654_v25, %s3749_s12 }
  0x9e   : > { %v3960_v27 = vpop.permute.xlu1 %565  ;;  %v624_v28 = vpop.permute.xlu0 %623 }
  0x9f   : > { %v634_v48 = vsel %vm5122_vm2, %v624_v28, %v626_v20 }
  0xa0   : > { %744 = vrot.lane.b32.xlu0 %v678_v26, %s3749_s12  ;;  %v674_v52 = vsel %vm658_vm1, %v614_v49, %v634_v48 }
  0xa2   : > { %v3963_v29 = vpop.permute.xlu1 %569  ;;  %v568_v30 = vpop.permute.xlu0 %567 }
  0xa3   : > { %v576_v54 = vsel %vm5121_vm5, %v568_v30, %v3963_v29  ;;  %v575_v10 = vsel %vm5121_vm5, %v3960_v27, %v568_v30 }
  0xa6   : > { %v3965_v31 = vpop.permute.xlu1 %585  ;;  %v3967_v32 = vpop.permute.xlu0 %571 }
  0xa7   : > { %v577_v24 = vsel %vm5121_vm5, %v3963_v29, %v3967_v32 }
  0xaa   : > { %v3969_v33 = vpop.permute.xlu1 %589  ;;  %v588_v34 = vpop.permute.xlu0 %587 }
  0xab   : > { %v596_v53 = vsel %vm5120_vm4, %v588_v34, %v3969_v33  ;;  %v595_v14 = vsel %vm5120_vm4, %v3965_v31, %v588_v34 }
  0xac   : > { %v671_v57 = vsel %vm658_vm1, %v576_v54, %v596_v53  ;;  %v670_v19 = vsel %vm658_vm1, %v575_v10, %v595_v14 }
  0xae   : > { %v3971_v35 = vpop.permute.xlu1 %563  ;;  %v592_v36 = vpop.permute.xlu0 %591 }
  0xaf   : > { %v673_v37 = vsel %vm658_vm1, %v3967_v32, %v592_v36  ;;  %v597_v22 = vsel %vm5120_vm4, %v3969_v33, %v592_v36  ;;  %v574_v28 = vsel %vm5121_vm5, %v3971_v35, %v3960_v27  ;;  %v3750_v32 = vmov 0.0  }
  0xb0   : > { %734 = vrot.lane.b32.xlu1 %v673_v37, %s3749_s12  ;;  %v672_v26 = vsel %vm658_vm1, %v577_v24, %v597_v22  ;;  %946 = vmatprep.mubr.f32.mxu1 %v3750_v32 }
  0xb1   : > { %875 = vmatprep.mubr.f32.mxu0 %v3750_v32 }
  0xb2   : > { %v526_v40 = vpop.permute.xlu1 %525  ;;  %v584_v41 = vpop.permute.xlu0 %583 }
  0xb3   : > { %v594_v30 = vsel %vm5120_vm4, %v584_v41, %v3965_v31 }
  0xb4   : > { %738 = vrot.lane.b32.xlu1 %v675_v42, %s3749_s12  ;;  %v669_v33 = vsel %vm658_vm1, %v574_v28, %v594_v30 }
  0xb6   : > { %v3984_v45 = vpop.permute.xlu1 %529  ;;  %v3986_v46 = vpop.permute.xlu0 %527 }
  0xb7   : > { %v535_v59 = vsel %vm5119_vm7, %v526_v40, %v3986_v46  ;;  %v536_v27 = vsel %vm5119_vm7, %v3986_v46, %v3984_v45 }
  0xb8   : > { %742 = vrot.lane.b32.xlu1 %v677_v47, %s3749_s12 }
  0xba   : > { %v546_v50 = vpop.permute.xlu1 %545  ;;  %v532_v51 = vpop.permute.xlu0 %531 }
  0xbb   : > { %v537_v8 = vsel %vm5119_vm7, %v3984_v45, %v532_v51 }
  0xbc   : > { %736 = vrot.lane.b32.xlu1 %v674_v52, %s3749_s12 }
  0xbe   : > { %v550_v55 = vpop.permute.xlu1 %549  ;;  %v548_v56 = vpop.permute.xlu0 %547 }
  0xbf   : > { %v555_v58 = vsel %vm553_vm6, %v546_v50, %v548_v56  ;;  %v556_v29 = vsel %vm553_vm6, %v548_v56, %v550_v55 }
  0xc0   : > { %730 = vrot.lane.b32.xlu1 %v671_v57, %s3749_s12  ;;  %v665_v62 = vsel %vm658_vm1, %v535_v59, %v555_v58 }
  0xc2   : > { %v552_v60 = vpop.permute.xlu0 %551  ;;  %v524_v61 = vpop.permute.xlu1 %523 }
  0xc3   : > { %v668_v63 = vsel %vm658_vm1, %v532_v51, %v552_v60  ;;  %v557_v6 = vsel %vm553_vm6, %v550_v55, %v552_v60  ;;  %v534_v15 = vsel %vm5119_vm7, %v524_v61, %v526_v40  ;;  %v680_v40 = vld [vmem:[%s5107_s2] sm:$0xf] }
  0xc4   : > { %718 = vrot.lane.b32.xlu1 %v665_v62, %s3749_s12  ;;  %724 = vrot.lane.b32.xlu0 %v668_v63, %s3749_s12  ;;  %v667_v13 = vsel %vm658_vm1, %v537_v8, %v557_v6 }
  0xc6   : > { %v544_v9 = vpop.permute.xlu0 %543  ;;  %v506_v11 = vpop.permute.xlu1 %505 }
  0xc7   : > { %v554_v16 = vsel %vm553_vm6, %v544_v9, %v546_v50 }
  0xc8   : > { %740 = vrot.lane.b32.xlu0 %v676_v12, %s3749_s12  ;;  %722 = vrot.lane.b32.xlu1 %v667_v13, %s3749_s12  ;;  %v664_v20 = vsel %vm658_vm1, %v534_v15, %v554_v16 }
  0xca   : > { %v510_v17 = vpop.permute.xlu1 %509  ;;  %v508_v18 = vpop.permute.xlu0 %507 }
  0xcb   : > { %v516_v21 = vsel %vm5118_vm8, %v508_v18, %v510_v17  ;;  %v515_v31 = vsel %vm5118_vm8, %v506_v11, %v508_v18 }
  0xcc   : > { %728 = vrot.lane.b32.xlu0 %v670_v19, %s3749_s12  ;;  %716 = vrot.lane.b32.xlu1 %v664_v20, %s3749_s12  ;;  %v661_v23 = vsel %vm658_vm1, %v3862_v2, %v516_v21  ;;  %v660_v34 = vsel %vm658_vm1, %v3870_v3, %v515_v31  ;;  %v3751_v3 = vmov 0  }
  0xcd   : > { %3717 = vset.pattern.permute.xlu1 %v3751_v3  ;;  %3718 = vset.pattern.permute.xlu0 %v3751_v3 }
  0xce   : > { %v512_v25 = vpop.permute.xlu0 %511  ;;  %v504_v36 = vpop.permute.xlu1 %503 }
  0xcf   : > { %v663_v2 = vsel %vm658_vm1, %v3856_v0, %v512_v25  ;;  %v666_v0 = vsel %vm658_vm1, %v536_v27, %v556_v29  ;;  %v517_v35 = vsel %vm5118_vm8, %v510_v17, %v512_v25  ;;  %v514_v38 = vsel %vm5118_vm8, %v504_v36, %v506_v11 }
  0xd0   : > { %732 = vrot.lane.b32.xlu0 %v672_v26, %s3749_s12  ;;  %710 = vrot.lane.b32.xlu1 %v661_v23, %s3749_s12  ;;  %v662_v37 = vsel %vm658_vm1, %v3878_v4, %v517_v35  ;;  %v659_v39 = vsel %vm658_vm1, %v3859_v1, %v514_v38  ;;  %v679_v23 = vld [vmem:[%s5106_s1] sm:$0xf]  ;;  %v385_v26 = vlaneseq }
  0xd2   : > { %v4121_v28 = vand.u32 127, %v385_v26 }
  0xd4   : > { %726 = vrot.lane.b32.xlu0 %v669_v33, %s3749_s12  ;;  %714 = vrot.lane.b32.xlu1 %v663_v2, %s3749_s12  ;;  %v388_v30 = vadd.s32 256, %v4121_v28  ;;  %v389_v2 = vadd.s32 384, %v4121_v28 }
  0xd6   : > { %v4125_v33 = vmul.u32.u64.low 4042322161, %v388_v30  ;;  %v4126_v29 = vmul.u32.u64.high 4042322161, %v388_v30, %v4125_v33  ;;  %v4128_v27 = vmul.u32.u64.low 4042322161, %v389_v2  ;;  %v4129_v31 = vmul.u32.u64.high 4042322161, %v389_v2, %v4128_v27 }
  0xd8   : > { %720 = vrot.lane.b32.xlu0 %v666_v0, %s3749_s12  ;;  %683 = vperm.xlu1 %3717, %v680_v40   ;;  %v387_v0 = vadd.s32 128, %v4121_v28  ;;  %v419_v38 = vshrl.u32 %v4126_v29, 5  ;;  %v390_v40 = vadd.s32 512, %v4121_v28 }
  0xda   : > { %v420_v3 = vmul.u32 34, %v419_v38 }
  0xdc   : > { %708 = vrot.lane.b32.xlu0 %v660_v34, %s3749_s12  ;;  %v4133_v34 = vmul.u32.u64.low 4042322161, %v4121_v28  ;;  %v4134_v35 = vmul.u32.u64.high 4042322161, %v4121_v28, %v4133_v34 }
  0xe0   : > { %712 = vrot.lane.b32.xlu0 %v662_v37, %s3749_s12  ;;  %v4136_v36 = vmul.u32.u64.low 4042322161, %v387_v0  ;;  %v4137_v37 = vmul.u32.u64.high 4042322161, %v387_v0, %v4136_v36 }
  0xe4   : > { %706 = vrot.lane.b32.xlu0 %v659_v39, %s3749_s12  ;;  %v430_v39 = vshrl.u32 %v4129_v31, 5 }
  0xf5   : > { %v4072_v41 = vpop.permute.xlu1 %754 }
  0xfa   : > { %v749_v4 = vpop.permute.xlu0 %748 }
  0xfe   : > { %v751_v42 = vpop.permute.xlu1 %750  ;;  %v753_v43 = vpop.permute.xlu0 %752 }
  0xff   : > { %v774_v44 = vsel %vm5117_vm9, %v749_v4, %v751_v42  ;;  %v776_v1 = vsel %vm5117_vm9, %v753_v43, %v4072_v41  ;;  %v775_v45 = vsel %vm5117_vm9, %v751_v42, %v753_v43  ;;  %v408_v42 = vshrl.u32 %v4137_v37, 5 }
 0x100   : > { %3459 = vmatprep.subr.msk.mxu0 %vm658_vm1, %v774_v44  ;;  %3462 = vmatprep.subr.msk.mxu1 %vm658_vm1, %v776_v1  ;;  %v4144_v43 = vmul.u32.u64.low 4042322161, %v390_v40  ;;  %v4145_v44 = vmul.u32.u64.high 4042322161, %v390_v40, %v4144_v43  ;;  %v421_v1 = vsub.s32 %v388_v30, %v420_v3 }
 0x101   : > { %3463 = vmatpush1.msk.msra.mxu1 %vm658_vm1, %v775_v45 }
 0x102   : > { %vm448_vm12 = vcmp.ne.s32.totalorder %v421_v1, 0  ;;  %vm453_vm13 = vcmp.lt.s32.totalorder %v421_v1, 0 }
 0x10e   : > { %v747_v46 = vpop.permute.xlu0 %746 }
 0x10f   : > { %v773_v47 = vsel %vm5117_vm9, %v747_v46, %v749_v4  ;;  %v431_v4 = vmul.u32 34, %v430_v39 }
 0x110   : > { %3460 = vmatpush1.msk.msra.mxu0 %vm658_vm1, %v773_v47  ;;  %v409_v47 = vmul.u32 34, %v408_v42 }
 0x111   : > { %v432_v46 = vsub.s32 %v389_v2, %v431_v4 }
 0x112   : > { %v745_v50 = vpop.permute.xlu0 %744 }
 0x113   : > { %vm449_vm14 = vcmp.ne.s32.totalorder %v432_v46, 0  ;;  %vm454_vm15 = vcmp.lt.s32.totalorder %v432_v46, 0 }
 0x114   : > { %vm459_vm8 = vmand %vm454_vm15, %vm449_vm14  ;;  %vm486_vm15 = vcmask 347136  }
 0x115   : > { %487 = vst.msk [vmem:[#allocation2] sm:$0xf] %vm486_vm15, %v3750_v32 }
 0x122   : > { %v4083_v48 = vpop.permute.xlu1 %734 }
 0x126   : > { %v739_v49 = vpop.permute.xlu1 %738 }
 0x12a   : > { %v743_v51 = vpop.permute.xlu1 %742 }
 0x12b   : > { %v772_v52 = vsel %vm5117_vm9, %v743_v51, %v745_v50 }
 0x12c   : > { %906 = vmatprep.subr.mxu1 %v772_v52  ;;  %v464_v52 = vadd.s32 34, %v432_v46 }
 0x12e   : > { %v737_v53 = vpop.permute.xlu1 %736 }
 0x12f   : > { %v769_v60 = vsel %vm5117_vm9, %v737_v53, %v739_v49  ;;  %v441_v53 = vshrl.u32 %v4145_v44, 5 }
 0x132   : > { %v731_v54 = vpop.permute.xlu1 %730 }
 0x136   : > { %v725_v55 = vpop.permute.xlu0 %724  ;;  %v719_v56 = vpop.permute.xlu1 %718 }
 0x13a   : > { %v741_v57 = vpop.permute.xlu0 %740  ;;  %v723_v63 = vpop.permute.xlu1 %722 }
 0x13b   : > { %v770_v58 = vsel %vm5117_vm9, %v739_v49, %v741_v57  ;;  %v771_v59 = vsel %vm5117_vm9, %v741_v57, %v743_v51  ;;  %v764_v8 = vsel %vm5117_vm9, %v723_v63, %v725_v55  ;;  %v410_v49 = vsub.s32 %v387_v0, %v409_v47 }
 0x13c   : > { %835 = vmatprep.subr.mxu0 %v770_v58  ;;  %907 = vmatpush1.msra.mxu1 %v771_v59  ;;  %v463_v51 = vadd.s32 34, %v421_v1  ;;  %v442_v59 = vmul.u32 34, %v441_v53 }
 0x13d   : > { %836 = vmatpush1.msra.mxu0 %v769_v60  ;;  %vm447_vm5 = vcmp.ne.s32.totalorder %v410_v49, 0  ;;  %vm452_vm2 = vcmp.lt.s32.totalorder %v410_v49, 0  ;;  %v462_v58 = vadd.s32 34, %v410_v49 }
 0x13e   : > { %v729_v61 = vpop.permute.xlu0 %728  ;;  %v717_v9 = vpop.permute.xlu1 %716 }
 0x13f   : > { %v766_v62 = vsel %vm5117_vm9, %v729_v61, %v731_v54  ;;  %v761_v10 = vsel %vm5117_vm9, %v717_v9, %v719_v56 }
 0x140   : > { %837 = vmatprep.subr.mxu0 %v766_v62 }
 0x142   : > { %v733_v5 = vpop.permute.xlu0 %732  ;;  %v711_v14 = vpop.permute.xlu1 %710 }
 0x143   : > { %v768_v6 = vsel %vm5117_vm9, %v733_v5, %v4083_v48  ;;  %v767_v7 = vsel %vm5117_vm9, %v731_v54, %v733_v5 }
 0x144   : > { %908 = vmatprep.subr.mxu1 %v768_v6  ;;  %v443_v6 = vsub.s32 %v390_v40, %v442_v59 }
 0x145   : > { %909 = vmatpush1.msra.mxu1 %v767_v7 }
 0x146   : > { %910 = vmatprep.subr.mxu1 %v764_v8  ;;  %v727_v11 = vpop.permute.xlu0 %726  ;;  %v715_v19 = vpop.permute.xlu1 %714 }
 0x147   : > { %v765_v12 = vsel %vm5117_vm9, %v727_v11, %v729_v61 }
 0x148   : > { %838 = vmatpush1.msra.mxu0 %v765_v12 }
 0x14a   : > { %v721_v13 = vpop.permute.xlu0 %720 }
 0x14b   : > { %v762_v15 = vsel %vm5117_vm9, %v719_v56, %v721_v13  ;;  %v763_v16 = vsel %vm5117_vm9, %v721_v13, %v723_v63  ;;  %v469_v56 = vsel %vm459_vm8, %v464_v52, %v432_v46 }
 0x14c   : > { %839 = vmatprep.subr.mxu0 %v762_v15  ;;  %911 = vmatpush1.msra.mxu1 %v763_v16  ;;  %vm474_vm14 = vcmp.lt.s32.totalorder %v469_v56, 16 }
 0x14d   : > { %840 = vmatpush1.msra.mxu0 %v761_v10  ;;  %v4172_v11 = vsel %vm474_vm14, 1.0, %v3750_v32 }
 0x14e   : > { %v709_v17 = vpop.permute.xlu0 %708 }
 0x14f   : > { %v758_v18 = vsel %vm5117_vm9, %v709_v17, %v711_v14 }
 0x150   : > { %841 = vmatprep.subr.mxu0 %v758_v18 }
 0x152   : > { %v713_v20 = vpop.permute.xlu0 %712 }
 0x153   : > { %v760_v21 = vsel %vm5117_vm9, %v713_v20, %v715_v19  ;;  %v759_v22 = vsel %vm5117_vm9, %v711_v14, %v713_v20  ;;  %v684_v61 = vpop.permute.xlu1 %683 }
 0x154   : > { %912 = vmatprep.subr.mxu1 %v760_v21 }
 0x155   : > { %913 = vmatpush1.msra.mxu1 %v759_v22 }
 0x156   : > { %v707_v24 = vpop.permute.xlu0 %706  ;;  %3464 = vmatmul.mubr.msk.f32.vlgmr.msra.gmra.mxu1 %vm797_vm10, %v679_v23 }
 0x157   : > { %v757_v25 = vsel %vm5117_vm9, %v707_v24, %v709_v17  ;;  %1453 = vmatprep.mubr.f32.mxu1 %v3750_v32  ;;  %vm4148_vm9 = vmand %vm453_vm13, %vm448_vm12  ;;  %v465_v17 = vadd.s32 34, %v443_v6 }
 0x158   : > { %842 = vmatpush1.msra.mxu0 %v757_v25  ;;  %vm4159_vm12 = vmand %vm452_vm2, %vm447_vm5  ;;  %vm450_vm5 = vcmp.ne.s32.totalorder %v443_v6, 0 }
 0x159   : > { %3461 = vmatmul.mubr.msk.f32.vlgmr.msra.gmra.mxu0 %vm797_vm10, %v679_v23  ;;  %3565 = vmatprep.subr.mxu0 %v3750_v32  ;;  %v467_v5 = vsel %vm4159_vm12, %v462_v58, %v410_v49 }
 0x15a   : > { %3566 = vmatpush3.msk.msra.mxu0 %vm658_vm1, %v4072_v41  ;;  %3575 = vmatprep.mubr.msk.f32.mxu0 %vm3752_vm11, %v3750_v32  ;;  %v397_v41 = vshrl.u32 %v4134_v35, 5 }
 0x15b   : > { %3567 = vmatprep.subr.mxu0 %v3750_v32 }
 0x15c   : > { %3568 = vmatpush3.msra.mxu0 %v745_v50  ;;  %v398_v45 = vmul.u32 34, %v397_v41 }
 0x15d   : > { %3569 = vmatprep.subr.mxu0 %v3750_v32 }
 0x15e   : > { %3570 = vmatpush3.msra.mxu0 %v4083_v48  ;;  %v399_v48 = vsub.s32 %v4121_v28, %v398_v45 }
 0x15f   : > { %3571 = vmatprep.subr.mxu0 %v3750_v32 }
 0x160   : > { %3572 = vmatpush3.msra.mxu0 %v725_v55  ;;  %vm446_vm7 = vcmp.ne.s32.totalorder %v399_v48, 0  ;;  %vm451_vm4 = vcmp.lt.s32.totalorder %v399_v48, 0  ;;  %v461_v54 = vadd.s32 34, %v399_v48  ;;  %v468_v55 = vsel %vm4148_vm9, %v463_v51, %v421_v1 }
 0x161   : > { %3573 = vmatprep.subr.mxu0 %v3750_v32  ;;  %vm4155_vm0 = vmand %vm451_vm4, %vm446_vm7  ;;  %vm473_vm13 = vcmp.lt.s32.totalorder %v468_v55, 16  ;;  %vm4178_vm4 = vcmp.lt.s32.totalorder %v467_v5, 16  ;;  %vm455_vm7 = vcmp.lt.s32.totalorder %v443_v6, 0  ;;  %vm488_vm9 = vcmask 814536  }
 0x162   : > { %3574 = vmatpush3.msra.mxu0 %v715_v19  ;;  %v466_v62 = vsel %vm4155_vm0, %v461_v54, %v399_v48  ;;  %v4169_v9 = vsel %vm473_vm13, 1.0, %v3750_v32  ;;  %489 = vst.msk [vmem:[#allocation2 + $0x10] sm:$0xf] %vm488_vm9, %v3750_v32  ;;  %v4192_v30 = vsel %vm4178_vm4, 1.0, %v3750_v32  ;;  %vm460_vm13 = vmand %vm455_vm7, %vm450_vm5  ;;  %vm1067_vm4 = vcmask 1047556  }
 0x163   : > { %3576 = vmatmul.mubr.msk.f32.vlgmr.msra.gmra.mxu0 %vm797_vm10, %v679_v23  ;;  %vm4174_vm2 = vcmp.lt.s32.totalorder %v466_v62, 16  ;;  %v470_v0 = vsel %vm460_vm13, %v465_v17, %v443_v6  ;;  %vm1058_vm5 = vcmask 351232   ;;  %vm1234_vm9 = vcmask 441344  }
 0x164   : > { %1524 = vmatprep.mubr.f32.mxu0 %v3750_v32  ;;  %v4187_v25 = vsel %vm4174_vm2, 1.0, %v3750_v32  ;;  %vm475_vm15 = vcmp.lt.s32.totalorder %v470_v0, 16  ;;  %vm1116_vm13 = vcmask 998400  }
 0x165   : > { %v4202_v3 = vsel %vm475_vm15, 1.0, %v3750_v32  ;;  %vm1155_vm15 = vcmask 744448  }
 0x216   : > { %v948_v63 = vpop.f32.mrf.mxu1 }
 0x217   : > { %v949_v7 = vadd.f32 %v948_v63, %v684_v61 }
 0x218   : > { %v950_v8 = vpop.f32.mrf.mxu1 }
 0x219   : > { %v877_v13 = vpop.f32.mrf.mxu0  ;;  %v951_v14 = vadd.f32 %v950_v8, %v684_v61  ;;  %vm1025_vm0 = vcmp.gt.f32.partialorder %v949_v7, 0.0  ;;  %v1030_v15 = vmul.f32 0.3, %v949_v7 }
 0x21a   : > { %v878_v10 = vadd.f32 %v877_v13, %v684_v61 }
 0x21b   : > { %vm1026_vm8 = vcmp.gt.f32.partialorder %v951_v14, 0.0  ;;  %v1031_v18 = vmul.f32 0.3, %v951_v14  ;;  %v879_v19 = vpop.f32.mrf.mxu0  ;;  %v1035_v20 = vsel %vm1025_vm0, %v949_v7, %v1030_v15  ;;  %vm1066_vm0 = vcmask 1043800  }
 0x21c   : > { %vm1023_vm12 = vcmp.gt.f32.partialorder %v878_v10, 0.0  ;;  %v1028_v21 = vmul.f32 0.3, %v878_v10  ;;  %v880_v22 = vadd.f32 %v879_v19, %v684_v61  ;;  %v1040_v23 = vmul.f32 %v4169_v9, %v1035_v20  ;;  %vm4206_vm7 = vmor %vm1067_vm4, %vm1066_vm0 }
 0x21d   : > { %v1036_v24 = vsel %vm1026_vm8, %v951_v14, %v1031_v18  ;;  %vm1071_vm8 = vcmask 461824  }
 0x21e   : > { %v1033_v2 = vsel %vm1023_vm12, %v878_v10, %v1028_v21  ;;  %vm1024_vm14 = vcmp.gt.f32.partialorder %v880_v22, 0.0  ;;  %v1029_v33 = vmul.f32 0.3, %v880_v22  ;;  %v1041_v29 = vmul.f32 %v4172_v11, %v1036_v24 }
 0x21f   : > { %v1038_v34 = vmul.f32 %v4187_v25, %v1033_v2  ;;  %vm1214_vm12 = vcmask 465920  }
 0x220   : > { %v1034_v27 = vsel %vm1024_vm14, %v880_v22, %v1029_v33  ;;  %v1049_v31 = vcombine.low %v1040_v23, %v1041_v29  ;;  %vm1175_vm14 = vcmask 719872  }
 0x221   : > { %v1039_v35 = vmul.f32 %v4192_v30, %v1034_v27 }
 0x222   : > { %1052 = vrot.lane.b32.xlu1 %v1049_v31, %s3753_s19 }
 0x223   : > { %v1019_v36 = vpop.f32.mrf.mxu0  ;;  %v1048_v37 = vcombine.low %v1038_v34, %v1039_v35 }
 0x224   : > { %v1020_v38 = vadd.f32 %v1019_v36, %v684_v61 }
 0x225   : > { %1050 = vrot.lane.b32.xlu0 %v1048_v37, %s3753_s19  ;;  %v3577_v39 = vpop.f32.mrf.mxu0 }
 0x226   : > { %vm1027_vm2 = vcmp.gt.f32.partialorder %v1020_v38, 0.0  ;;  %v1032_v40 = vmul.f32 0.3, %v1020_v38 }
 0x228   : > { %v1037_v41 = vsel %vm1027_vm2, %v1020_v38, %v1032_v40  ;;  %vm1096_vm2 = vcmask 1022976  }
 0x229   : > { %v1042_v4 = vmul.f32 %v4202_v3, %v1037_v41 }
 0x22b   : > { %1054 = vrot.lane.b32.xlu0 %v1042_v4, %s3753_s19 }
 0x294   : > { %v1053_v1 = vpop.permute.xlu1 %1052 }
 0x295   : > { %v1057_v46 = vrot.slane %v1053_v1, 4 }
 0x297   : > { %v1051_v42 = vpop.permute.xlu0 %1050 }
 0x298   : > { %v1056_v44 = vrot.slane %v1051_v42, 4 }
 0x29a   : > { %v1059_v45 = vsel %vm1058_vm5, %v1056_v44, %v1051_v42  ;;  %v1060_v50 = vsel %vm658_vm1, %v1056_v44, %v1057_v46 }
 0x29b   : > { %1069 = vst.msk [vmem:[#allocation2] sm:$0xff] %vm4206_vm7, %v1059_v45  ;;  %v4235_v51 = vsel %vm1058_vm5, %v1060_v50, %v1053_v1 }
 0x29c   : > { %v4268_v54 = vcombine.high %v4235_v51, %v4235_v51  ;;  %v1084_v55 = vcombine.low %v4235_v51, %v4235_v51 }
 0x29d   : > { %v1055_v47 = vpop.permute.xlu0 %1054 }
 0x29e   : > { %v1062_v48 = vsel %vm1058_vm5, %v1057_v46, %v1055_v47 }
 0x29f   : > { %1072 = vst.msk [vmem:[#allocation2 + $0x10] sm:$0xf] %vm1071_vm8, %v1062_v48 }
 0x2a2   : > { %v4215_v49 = vld [vmem:[#allocation2] sm:$0xff] }
 0x2a3   : > { %1224 = vrot.lane.b32.xlu0 %v4215_v49, %s3754_s20  ;;  %1206 = vrot.lane.b32.xlu1 %v4215_v49, %s3755_s21  ;;  %v4247_v52 = vcombine.high %v4215_v49, %v4215_v49  ;;  %v1083_v53 = vcombine.low %v4215_v49, %v4215_v49 }
 0x2a6   : > { %v4287_v56 = vld [vmem:[#allocation2 + $0x10] sm:$0xf] }
 0x2a7   : > { %1145 = vrot.lane.b32.xlu0 %v4215_v49, %s3756_s13  ;;  %1185 = vrot.lane.b32.xlu1 %v4215_v49, %s3742_s24  ;;  %v1085_v57 = vcombine.low %v4287_v56, %v4287_v56 }
 0x2ab   : > { %1106 = vrot.lane.b32.xlu0 %v4215_v49, %s3757_s14  ;;  %1167 = vrot.lane.b32.xlu1 %v4215_v49, %s3758_s15 }
 0x2af   : > { %1088 = vrot.lane.b32.xlu0 %v4215_v49, %s3759_s16  ;;  %1128 = vrot.lane.b32.xlu1 %v4215_v49, %s3747_s29 }
 0x2b3   : > { %1228 = vrot.lane.b32.xlu0 %v4235_v51, %s3754_s20  ;;  %1189 = vrot.lane.b32.xlu1 %v4235_v51, %s3742_s24 }
 0x2b7   : > { %1092 = vrot.lane.b32.xlu0 %v4235_v51, %s3759_s16  ;;  %1210 = vrot.lane.b32.xlu1 %v4235_v51, %s3755_s21 }
 0x2bb   : > { %1149 = vrot.lane.b32.xlu1 %v4235_v51, %s3756_s13  ;;  %1187 = vrot.lane.b32.xlu0 %v4247_v52, %s3742_s24 }
 0x2bf   : > { %1171 = vrot.lane.b32.xlu1 %v4235_v51, %s3758_s15  ;;  %1204 = vrot.lane.b32.xlu0 %v1083_v53, %s3755_s21 }
 0x2c3   : > { %1110 = vrot.lane.b32.xlu1 %v4235_v51, %s3757_s14  ;;  %1147 = vrot.lane.b32.xlu0 %v4247_v52, %s3756_s13 }
 0x2c7   : > { %1132 = vrot.lane.b32.xlu1 %v4235_v51, %s3747_s29  ;;  %1108 = vrot.lane.b32.xlu0 %v4247_v52, %s3757_s14 }
 0x2cb   : > { %1191 = vrot.lane.b32.xlu0 %v4268_v54, %s3742_s24  ;;  %1226 = vrot.lane.b32.xlu1 %v4247_v52, %s3754_s20 }
 0x2cf   : > { %1208 = vrot.lane.b32.xlu0 %v1084_v55, %s3755_s21  ;;  %1165 = vrot.lane.b32.xlu1 %v1083_v53, %s3758_s15 }
 0x2d3   : > { %1151 = vrot.lane.b32.xlu0 %v4268_v54, %s3756_s13  ;;  %1126 = vrot.lane.b32.xlu1 %v1083_v53, %s3747_s29 }
 0x2d7   : > { %1169 = vrot.lane.b32.xlu0 %v1084_v55, %s3758_s15  ;;  %1230 = vrot.lane.b32.xlu1 %v4268_v54, %s3754_s20 }
 0x2db   : > { %1112 = vrot.lane.b32.xlu0 %v4268_v54, %s3757_s14  ;;  %1090 = vrot.lane.b32.xlu1 %v1084_v55, %s3759_s16 }
 0x2df   : > { %1130 = vrot.lane.b32.xlu0 %v1084_v55, %s3747_s29  ;;  %1232 = vrot.lane.b32.xlu1 %v4287_v56, %s3754_s20  ;;  %s3762_s20 = smov 42  }
 0x2e3   : > { %1193 = vrot.lane.b32.xlu0 %v4287_v56, %s3742_s24  ;;  %1114 = vrot.lane.b32.xlu1 %v4287_v56, %s3757_s14 }
 0x2e7   : > { %1153 = vrot.lane.b32.xlu0 %v4287_v56, %s3756_s13  ;;  %1212 = vrot.lane.b32.xlu1 %v1085_v57, %s3755_s21  ;;  %s3763_s21 = smov 85   ;;  %s3764_s13 = smov 110  }
 0x2eb   : > { %1134 = vrot.lane.b32.xlu0 %v1085_v57, %s3747_s29  ;;  %1173 = vrot.lane.b32.xlu1 %v1085_v57, %s3758_s15  ;;  %s3760_s15 = smov 51  }
 0x2ef   : > { %1094 = vrot.lane.b32.xlu0 %v1085_v57, %s3759_s16  ;;  %1086 = vrot.lane.b32.xlu1 %v1083_v53, %s3759_s16  ;;  %s3761_s16 = smov 76  }
 0x315   : > { %v1207_v58 = vpop.permute.xlu1 %1206  ;;  %v1225_v59 = vpop.permute.xlu0 %1224 }
 0x319   : > { %v1186_v60 = vpop.permute.xlu1 %1185  ;;  %v1146_v61 = vpop.permute.xlu0 %1145 }
 0x31d   : > { %v4305_v62 = vpop.permute.xlu1 %1167  ;;  %v1107_v63 = vpop.permute.xlu0 %1106 }
 0x321   : > { %v4307_v5 = vpop.permute.xlu1 %1128  ;;  %v4309_v6 = vpop.permute.xlu0 %1088 }
 0x325   : > { %v4311_v7 = vpop.permute.xlu1 %1189  ;;  %v1229_v8 = vpop.permute.xlu0 %1228 }
 0x329   : > { %v4313_v12 = vpop.permute.xlu1 %1210  ;;  %v4315_v13 = vpop.permute.xlu0 %1092 }
 0x32d   : > { %v4317_v14 = vpop.permute.xlu1 %1149  ;;  %v1188_v15 = vpop.permute.xlu0 %1187 }
 0x32e   : > { %v1195_v36 = vsel %vm613_vm3, %v1186_v60, %v1188_v15  ;;  %v1196_v46 = vsel %vm613_vm3, %v1188_v15, %v4311_v7 }
 0x331   : > { %v4319_v16 = vpop.permute.xlu1 %1171  ;;  %v1205_v10 = vpop.permute.xlu0 %1204 }
 0x332   : > { %v1215_v34 = vsel %vm1214_vm12, %v1205_v10, %v1207_v58 }
 0x333   : > { %v1254_v38 = vsel %vm658_vm1, %v1195_v36, %v1215_v34 }
 0x335   : > { %v4321_v17 = vpop.permute.xlu1 %1110  ;;  %v4323_v18 = vpop.permute.xlu0 %1147 }
 0x336   : > { %v1156_v45 = vsel %vm1155_vm15, %v1146_v61, %v4323_v18 }
 0x339   : > { %v4325_v19 = vpop.permute.xlu1 %1132  ;;  %v1109_v20 = vpop.permute.xlu0 %1108 }
 0x33a   : > { %v1117_v40 = vsel %vm1116_vm13, %v1107_v63, %v1109_v20  ;;  %v1118_v15 = vsel %vm1116_vm13, %v1109_v20, %v4321_v17 }
 0x33d   : > { %v1227_v21 = vpop.permute.xlu1 %1226  ;;  %v4327_v22 = vpop.permute.xlu0 %1191 }
 0x33e   : > { %v1236_v23 = vsel %vm1234_vm9, %v1227_v21, %v1229_v8  ;;  %v1235_v33 = vsel %vm1234_vm9, %v1225_v59, %v1227_v21  ;;  %v1197_v20 = vsel %vm613_vm3, %v4311_v7, %v4327_v22 }
 0x33f   : > { %1328 = vrot.lane.b32.xlu1 %v1236_v23, %s3757_s14 }
 0x341   : > { %v1166_v24 = vpop.permute.xlu1 %1165  ;;  %v1209_v2 = vpop.permute.xlu0 %1208 }
 0x342   : > { %v1176_v4 = vsel %vm1175_vm14, %v1166_v24, %v4305_v62  ;;  %v1216_v1 = vsel %vm1214_vm12, %v1207_v58, %v1209_v2 }
 0x343   : > { %1326 = vrot.lane.b32.xlu1 %v1235_v33, %s3757_s14  ;;  %v1249_v48 = vsel %vm658_vm1, %v1156_v45, %v1176_v4  ;;  %v1255_v50 = vsel %vm658_vm1, %v1196_v46, %v1216_v1  ;;  %v1217_v33 = vsel %vm1214_vm12, %v1209_v2, %v4313_v12  ;;  %v1157_v2 = vsel %vm1155_vm15, %v4323_v18, %v4317_v14 }
 0x345   : > { %v1127_v29 = vpop.permute.xlu1 %1126  ;;  %v4333_v27 = vpop.permute.xlu0 %1151 }
 0x346   : > { %v1136_v39 = vsel %vm553_vm6, %v1127_v29, %v4307_v5  ;;  %v1158_v59 = vsel %vm1155_vm15, %v4317_v14, %v4333_v27 }
 0x347   : > { %v1244_v44 = vsel %vm658_vm1, %v1117_v40, %v1136_v39 }
 0x349   : > { %v1231_v31 = vpop.permute.xlu1 %1230  ;;  %v1170_v35 = vpop.permute.xlu0 %1169 }
 0x34a   : > { %v1237_v0 = vsel %vm1234_vm9, %v1229_v8, %v1231_v31  ;;  %v1178_v58 = vsel %vm1175_vm14, %v1170_v35, %v4319_v16 }
 0x34b   : > { %1330 = vrot.lane.b32.xlu0 %v1237_v0, %s3757_s14  ;;  %v1251_v63 = vsel %vm658_vm1, %v1158_v59, %v1178_v58  ;;  %v1256_v0 = vsel %vm658_vm1, %v1197_v20, %v1217_v33 }
 0x34d   : > { %v4339_v37 = vpop.permute.xlu1 %1090  ;;  %v4348_v42 = vpop.permute.xlu0 %1112 }
 0x34e   : > { %v1099_v24 = vsel %vm1096_vm2, %v4339_v37, %v4315_v13 }
 0x34f   : > { %1316 = vrot.lane.b32.xlu0 %v1254_v38, %s3757_s14  ;;  %v1098_v38 = vsel %vm1096_vm2, %v4309_v6, %v4339_v37 }
 0x351   : > { %v1233_v41 = vpop.permute.xlu1 %1232  ;;  %v1131_v53 = vpop.permute.xlu0 %1130 }
 0x352   : > { %1334 = vrot.lane.b32.xlu1 %v1233_v41, %s3757_s14  ;;  %v1238_v57 = vsel %vm1234_vm9, %v1231_v31, %v1233_v41  ;;  %v1137_v8 = vsel %vm553_vm6, %v4307_v5, %v1131_v53  ;;  %v1241_v31 = vsel %vm658_vm1, %v4235_v51, %v1099_v24  ;;  %v1138_v7 = vsel %vm553_vm6, %v1131_v53, %v4325_v19 }
 0x353   : > { %1296 = vrot.lane.b32.xlu0 %v1244_v44, %s3757_s14  ;;  %v1245_v23 = vsel %vm658_vm1, %v1118_v15, %v1137_v8 }
 0x355   : > { %v4358_v47 = vpop.permute.xlu1 %1114  ;;  %v1194_v61 = vpop.permute.xlu0 %1193 }
 0x356   : > { %1306 = vrot.lane.b32.xlu1 %v1249_v48, %s3757_s14 }
 0x357   : > { %1318 = vrot.lane.b32.xlu0 %v1255_v50, %s3757_s14 }
 0x359   : > { %v1213_v55 = vpop.permute.xlu1 %1212  ;;  %v1154_v29 = vpop.permute.xlu0 %1153 }
 0x35a   : > { %v1258_v36 = vsel %vm658_vm1, %v1194_v61, %v1213_v55 }
 0x35b   : > { %1332 = vrot.lane.b32.xlu0 %v1238_v57, %s3757_s14 }
 0x35d   : > { %v1174_v60 = vpop.permute.xlu1 %1173  ;;  %v1135_v34 = vpop.permute.xlu0 %1134 }
 0x35e   : > { %v1179_v14 = vsel %vm1175_vm14, %v4319_v16, %v1174_v60  ;;  %v1240_v16 = vsel %vm658_vm1, %v4247_v52, %v1098_v38  ;;  %v1253_v37 = vsel %vm658_vm1, %v1154_v29, %v1174_v60  ;;  %v1260_v52 = vld [vmem:[%s5109_s4] sm:$0xf] }
 0x35f   : > { %1310 = vrot.lane.b32.xlu0 %v1251_v63, %s3757_s14 }
 0x361   : > { %v1087_v10 = vpop.permute.xlu1 %1086  ;;  %v1095_v39 = vpop.permute.xlu0 %1094 }
 0x362   : > { %v1097_v21 = vsel %vm1096_vm2, %v1087_v10, %v4309_v6  ;;  %v1100_v41 = vsel %vm1096_vm2, %v4315_v13, %v1095_v39  ;;  %v1198_v13 = vsel %vm613_vm3, %v4327_v22, %v1194_v61  ;;  %v1243_v22 = vsel %vm658_vm1, %v4287_v56, %v1095_v39 }
 0x363   : > { %1298 = vrot.lane.b32.xlu0 %v1245_v23, %s3757_s14  ;;  %v1239_v5 = vsel %vm658_vm1, %v4215_v49, %v1097_v21  ;;  %v1177_v49 = vsel %vm1175_vm14, %v4305_v62, %v1170_v35  ;;  %v1119_v62 = vsel %vm1116_vm13, %v4321_v17, %v4348_v42  ;;  %v1248_v35 = vsel %vm658_vm1, %v4358_v47, %v1135_v34 }
 0x364   : > { %1286 = vrot.lane.b32.xlu1 %v1239_v5, %s3757_s14  ;;  %v1250_v51 = vsel %vm658_vm1, %v1157_v2, %v1177_v49  ;;  %v1246_v18 = vsel %vm658_vm1, %v1119_v62, %v1138_v7  ;;  %v1159_v17 = vsel %vm1155_vm15, %v4333_v27, %v1154_v29  ;;  %v1242_v6 = vsel %vm658_vm1, %v4268_v54, %v1100_v41  ;;  %v1259_v2 = vld [vmem:[%s5108_s3] sm:$0xf] }
 0x365   : > { %v1252_v40 = vsel %vm658_vm1, %v1159_v17, %v1179_v14  ;;  %v1218_v27 = vsel %vm1214_vm12, %v4313_v12, %v1213_v55  ;;  %v1139_v54 = vsel %vm553_vm6, %v4325_v19, %v1135_v34  ;;  %v1120_v12 = vsel %vm1116_vm13, %v4348_v42, %v4358_v47 }
 0x366   : > { %v1257_v4 = vsel %vm658_vm1, %v1198_v13, %v1218_v27  ;;  %v1247_v44 = vsel %vm658_vm1, %v1120_v12, %v1139_v54  ;;  %vm1807_vm14 = vcmask 343040   ;;  %vm1787_vm15 = vcmask 416768  }
 0x367   : > { %1290 = vrot.lane.b32.xlu0 %v1241_v31, %s3757_s14  ;;  %vm1728_vm2 = vcmask 695296  }
 0x368   : > { %1320 = vrot.lane.b32.xlu1 %v1256_v0, %s3757_s14 }
 0x36b   : > { %1324 = vrot.lane.b32.xlu0 %v1258_v36, %s3757_s14 }
 0x36c   : > { %1308 = vrot.lane.b32.xlu1 %v1250_v51, %s3757_s14 }
 0x36f   : > { %1304 = vrot.lane.b32.xlu0 %v1248_v35, %s3757_s14 }
 0x370   : > { %1300 = vrot.lane.b32.xlu1 %v1246_v18, %s3757_s14 }
 0x373   : > { %1312 = vrot.lane.b32.xlu0 %v1252_v40, %s3757_s14 }
 0x374   : > { %1288 = vrot.lane.b32.xlu1 %v1240_v16, %s3757_s14 }
 0x377   : > { %1292 = vrot.lane.b32.xlu0 %v1242_v6, %s3757_s14 }
 0x378   : > { %1314 = vrot.lane.b32.xlu1 %v1253_v37, %s3757_s14 }
 0x37b   : > { %1263 = vperm.xlu0 %3718, %v1260_v52  }
 0x37c   : > { %1322 = vrot.lane.b32.xlu1 %v1257_v4, %s3757_s14 }
 0x380   : > { %1302 = vrot.lane.b32.xlu1 %v1247_v44, %s3757_s14 }
 0x384   : > { %1294 = vrot.lane.b32.xlu1 %v1243_v22, %s3757_s14  ;;  %s3765_s14 = smov 119  }
 0x3b1   : > { %v1329_v1 = vpop.permute.xlu1 %1328 }
 0x3b5   : > { %v1327_v45 = vpop.permute.xlu1 %1326 }
 0x3b6   : > { %v1352_v48 = vsel %vm1116_vm13, %v1327_v45, %v1329_v1 }
 0x3bd   : > { %v1331_v46 = vpop.permute.xlu0 %1330 }
 0x3be   : > { %v1353_v19 = vsel %vm1116_vm13, %v1329_v1, %v1331_v46 }
 0x3bf   : > { %3467 = vmatprep.subr.msk.mxu1 %vm658_vm1, %v1353_v19 }
 0x3c0   : > { %3468 = vmatpush1.msk.msra.mxu1 %vm658_vm1, %v1352_v48 }
 0x3c1   : > { %v1317_v42 = vpop.permute.xlu0 %1316 }
 0x3c4   : > { %v1335_v53 = vpop.permute.xlu1 %1334 }
 0x3c5   : > { %v1297_v47 = vpop.permute.xlu0 %1296 }
 0x3c8   : > { %v1307_v59 = vpop.permute.xlu1 %1306 }
 0x3c9   : > { %v1319_v50 = vpop.permute.xlu0 %1318 }
 0x3ca   : > { %v1348_v15 = vsel %vm1116_vm13, %v1317_v42, %v1319_v50 }
 0x3cd   : > { %v1333_v55 = vpop.permute.xlu0 %1332 }
 0x3ce   : > { %v1354_v56 = vsel %vm1116_vm13, %v1331_v46, %v1333_v55  ;;  %v1355_v57 = vsel %vm1116_vm13, %v1333_v55, %v1335_v53 }
 0x3cf   : > { %3470 = vmatprep.subr.msk.mxu0 %vm658_vm1, %v1355_v57 }
 0x3d0   : > { %3471 = vmatpush1.msk.msra.mxu0 %vm658_vm1, %v1354_v56 }
 0x3d1   : > { %v1311_v58 = vpop.permute.xlu0 %1310 }
 0x3d5   : > { %v1299_v61 = vpop.permute.xlu0 %1298 }
 0x3d6   : > { %v1287_v60 = vpop.permute.xlu1 %1286  ;;  %v1340_v20 = vsel %vm1116_vm13, %v1297_v47, %v1299_v61 }
 0x3d9   : > { %v1291_v10 = vpop.permute.xlu0 %1290 }
 0x3da   : > { %v1321_v63 = vpop.permute.xlu1 %1320 }
 0x3db   : > { %v1349_v8 = vsel %vm1116_vm13, %v1319_v50, %v1321_v63 }
 0x3dc   : > { %1413 = vmatprep.subr.mxu1 %v1349_v8 }
 0x3dd   : > { %1414 = vmatpush1.msra.mxu1 %v1348_v15  ;;  %v1325_v33 = vpop.permute.xlu0 %1324 }
 0x3de   : > { %v1309_v21 = vpop.permute.xlu1 %1308 }
 0x3df   : > { %v1345_v23 = vsel %vm1116_vm13, %v1309_v21, %v1311_v58  ;;  %v1344_v24 = vsel %vm1116_vm13, %v1307_v59, %v1309_v21 }
 0x3e0   : > { %1415 = vmatprep.subr.mxu1 %v1345_v23 }
 0x3e1   : > { %1416 = vmatpush1.msra.mxu1 %v1344_v24  ;;  %v1305_v34 = vpop.permute.xlu0 %1304 }
 0x3e2   : > { %v1301_v5 = vpop.permute.xlu1 %1300 }
 0x3e3   : > { %v1341_v29 = vsel %vm1116_vm13, %v1299_v61, %v1301_v5 }
 0x3e4   : > { %1417 = vmatprep.subr.mxu1 %v1341_v29 }
 0x3e5   : > { %1418 = vmatpush1.msra.mxu1 %v1340_v20  ;;  %v1313_v7 = vpop.permute.xlu0 %1312 }
 0x3e6   : > { %v1289_v31 = vpop.permute.xlu1 %1288  ;;  %v1346_v38 = vsel %vm1116_vm13, %v1311_v58, %v1313_v7 }
 0x3e7   : > { %v1337_v0 = vsel %vm1116_vm13, %v1289_v31, %v1291_v10  ;;  %v1336_v49 = vsel %vm1116_vm13, %v1287_v60, %v1289_v31 }
 0x3e8   : > { %1419 = vmatprep.subr.mxu1 %v1337_v0 }
 0x3e9   : > { %1420 = vmatpush1.msra.mxu1 %v1336_v49  ;;  %v1293_v40 = vpop.permute.xlu0 %1292 }
 0x3ea   : > { %v1315_v36 = vpop.permute.xlu1 %1314  ;;  %3469 = vmatmul.mubr.msk.f32.vlgmr.msra.gmra.mxu1 %vm797_vm10, %v1259_v2  ;;  %3578 = vmatprep.subr.mxu1 %v3750_v32  ;;  %v1338_v6 = vsel %vm1116_vm13, %v1291_v10, %v1293_v40 }
 0x3eb   : > { %3579 = vmatpush3.msk.msra.mxu1 %vm658_vm1, %v1335_v53  ;;  %3588 = vmatprep.mubr.msk.f32.mxu1 %vm3752_vm11, %v3750_v32  ;;  %v1347_v14 = vsel %vm1116_vm13, %v1313_v7, %v1315_v36 }
 0x3ec   : > { %3580 = vmatprep.subr.mxu1 %v3750_v32 }
 0x3ed   : > { %3581 = vmatpush3.msra.mxu1 %v1325_v33 }
 0x3ee   : > { %v1323_v51 = vpop.permute.xlu1 %1322  ;;  %3582 = vmatprep.subr.mxu1 %v3750_v32 }
 0x3ef   : > { %3583 = vmatpush3.msra.mxu1 %v1315_v36  ;;  %v1351_v62 = vsel %vm1116_vm13, %v1323_v51, %v1325_v33  ;;  %v1350_v35 = vsel %vm1116_vm13, %v1321_v63, %v1323_v51 }
 0x3f0   : > { %1484 = vmatprep.subr.mxu0 %v1351_v62  ;;  %3584 = vmatprep.subr.mxu1 %v3750_v32 }
 0x3f1   : > { %1485 = vmatpush1.msra.mxu0 %v1350_v35  ;;  %3585 = vmatpush3.msra.mxu1 %v1305_v34  ;;  %v1833_v35 = vld [vmem:[%s5111_s6] sm:$0xf] }
 0x3f2   : > { %v1303_v18 = vpop.permute.xlu1 %1302  ;;  %1486 = vmatprep.subr.mxu0 %v1347_v14  ;;  %3586 = vmatprep.subr.mxu1 %v3750_v32 }
 0x3f3   : > { %1487 = vmatpush1.msra.mxu0 %v1346_v38  ;;  %v1343_v39 = vsel %vm1116_vm13, %v1303_v18, %v1305_v34  ;;  %v1342_v17 = vsel %vm1116_vm13, %v1301_v5, %v1303_v18 }
 0x3f4   : > { %1488 = vmatprep.subr.mxu0 %v1343_v39 }
 0x3f5   : > { %1489 = vmatpush1.msra.mxu0 %v1342_v17 }
 0x3f6   : > { %v1295_v41 = vpop.permute.xlu1 %1294  ;;  %v1264_v37 = vpop.permute.xlu0 %1263 }
 0x3f7   : > { %3587 = vmatpush3.msra.mxu1 %v1295_v41  ;;  %v1339_v16 = vsel %vm1116_vm13, %v1293_v40, %v1295_v41 }
 0x3f8   : > { %1490 = vmatprep.subr.mxu0 %v1339_v16  ;;  %3589 = vmatmul.mubr.msk.f32.vlgmr.msra.gmra.mxu1 %vm797_vm10, %v1259_v2 }
 0x3f9   : > { %1491 = vmatpush1.msra.mxu0 %v1338_v6  ;;  %1987 = vmatprep.mubr.f32.mxu1 %v3750_v32 }
 0x3fa   : > { %3472 = vmatmul.mubr.msk.f32.vlgmr.msra.gmra.mxu0 %vm797_vm10, %v1259_v2 }
 0x3fb   : > { %1916 = vmatprep.mubr.f32.mxu0 %v3750_v32 }
 0x4aa   : > { %v1455_v27 = vpop.f32.mrf.mxu1 }
 0x4ab   : > { %v1456_v13 = vadd.f32 %v1455_v27, %v1264_v37 }
 0x4ac   : > { %v1457_v52 = vpop.f32.mrf.mxu1 }
 0x4ad   : > { %v1458_v4 = vadd.f32 %v1457_v52, %v1264_v37  ;;  %vm1601_vm0 = vcmp.gt.f32.partialorder %v1456_v13, 0.0  ;;  %v1606_v54 = vmul.f32 0.3, %v1456_v13 }
 0x4af   : > { %vm1602_vm4 = vcmp.gt.f32.partialorder %v1458_v4, 0.0  ;;  %v1607_v12 = vmul.f32 0.3, %v1458_v4  ;;  %v1611_v44 = vsel %vm1601_vm0, %v1456_v13, %v1606_v54  ;;  %vm1748_vm0 = vcmask 621568  }
 0x4b0   : > { %v1616_v45 = vmul.f32 %v4187_v25, %v1611_v44 }
 0x4b1   : > { %v1612_v22 = vsel %vm1602_vm4, %v1458_v4, %v1607_v12  ;;  %vm1689_vm4 = vcmask 900096  }
 0x4b2   : > { %v1617_v1 = vmul.f32 %v4192_v30, %v1612_v22 }
 0x4b4   : > { %v1626_v46 = vcombine.low %v1616_v45, %v1617_v1 }
 0x4b6   : > { %1628 = vrot.lane.b32.xlu1 %v1626_v46, %s3753_s19 }
 0x4b8   : > { %v1597_v19 = vpop.f32.mrf.mxu1 }
 0x4b9   : > { %v1598_v48 = vadd.f32 %v1597_v19, %v1264_v37 }
 0x4ba   : > { %v1526_v42 = vpop.f32.mrf.mxu0  ;;  %v3590_v47 = vpop.f32.mrf.mxu1 }
 0x4bb   : > { %vm1605_vm9 = vcmp.gt.f32.partialorder %v1598_v48, 0.0  ;;  %v1610_v50 = vmul.f32 0.3, %v1598_v48  ;;  %v1527_v53 = vadd.f32 %v1526_v42, %v1264_v37 }
 0x4bc   : > { %v1528_v55 = vpop.f32.mrf.mxu0 }
 0x4bd   : > { %v1615_v56 = vsel %vm1605_vm9, %v1598_v48, %v1610_v50  ;;  %vm1603_vm12 = vcmp.gt.f32.partialorder %v1527_v53, 0.0  ;;  %v1608_v57 = vmul.f32 0.3, %v1527_v53  ;;  %v1529_v58 = vadd.f32 %v1528_v55, %v1264_v37 }
 0x4be   : > { %v1620_v59 = vmul.f32 %v4202_v3, %v1615_v56  ;;  %vm1669_vm9 = vcmask 973824  }
 0x4bf   : > { %v1613_v60 = vsel %vm1603_vm12, %v1527_v53, %v1608_v57  ;;  %vm1604_vm13 = vcmp.gt.f32.partialorder %v1529_v58, 0.0  ;;  %v1609_v61 = vmul.f32 0.3, %v1529_v58 }
 0x4c0   : > { %1632 = vrot.lane.b32.xlu0 %v1620_v59, %s3753_s19  ;;  %v1618_v8 = vmul.f32 %v4169_v9, %v1613_v60 }
 0x4c1   : > { %v1614_v63 = vsel %vm1604_vm13, %v1529_v58, %v1609_v61 }
 0x4c2   : > { %v1619_v15 = vmul.f32 %v4172_v11, %v1614_v63 }
 0x4c4   : > { %v1627_v10 = vcombine.low %v1618_v8, %v1619_v15 }
 0x4c6   : > { %1630 = vrot.lane.b32.xlu1 %v1627_v10, %s3753_s19 }
 0x528   : > { %v1629_v21 = vpop.permute.xlu1 %1628 }
 0x529   : > { %v1634_v23 = vrot.slane %v1629_v21, 4 }
 0x52b   : > { %v1636_v24 = vsel %vm1058_vm5, %v1634_v23, %v1629_v21 }
 0x52c   : > { %1643 = vst.msk [vmem:[#allocation2] sm:$0xff] %vm4206_vm7, %v1636_v24 }
 0x532   : > { %v1633_v20 = vpop.permute.xlu0 %1632 }
 0x533   : > { %v4505_v5 = vld [vmem:[#allocation2] sm:$0xff] }
 0x534   : > { %1758 = vrot.lane.b32.xlu0 %v4505_v5, %s3742_s24  ;;  %1779 = vrot.lane.b32.xlu1 %v4505_v5, %s3760_s15  ;;  %v4517_v31 = vcombine.high %v4505_v5, %v4505_v5  ;;  %v1656_v49 = vcombine.low %v4505_v5, %v4505_v5 }
 0x538   : > { %1740 = vrot.lane.b32.xlu0 %v4505_v5, %s3761_s16  ;;  %1797 = vrot.lane.b32.xlu1 %v4505_v5, %s3762_s20  ;;  %v1631_v33 = vpop.permute.xlu1 %1630 }
 0x539   : > { %v1635_v29 = vrot.slane %v1631_v33, 4 }
 0x53b   : > { %v1639_v0 = vsel %vm1058_vm5, %v1635_v29, %v1633_v20  ;;  %v1637_v2 = vsel %vm658_vm1, %v1634_v23, %v1635_v29 }
 0x53c   : > { %1645 = vst.msk [vmem:[#allocation2 + $0x10] sm:$0xf] %vm1071_vm8, %v1639_v0  ;;  %1718 = vrot.lane.b32.xlu0 %v4505_v5, %s3763_s21  ;;  %1799 = vrot.lane.b32.xlu1 %v4517_v31, %s3762_s20  ;;  %v4542_v34 = vsel %vm1058_vm5, %v1637_v2, %v1631_v33 }
 0x53d   : > { %v4568_v51 = vcombine.high %v4542_v34, %v4542_v34  ;;  %v1657_v7 = vcombine.low %v4542_v34, %v4542_v34 }
 0x540   : > { %1701 = vrot.lane.b32.xlu0 %v4505_v5, %s3747_s29  ;;  %1760 = vrot.lane.b32.xlu1 %v4517_v31, %s3742_s24 }
 0x543   : > { %v4556_v36 = vld [vmem:[#allocation2 + $0x10] sm:$0xf] }
 0x544   : > { %1679 = vrot.lane.b32.xlu0 %v4505_v5, %s3764_s13  ;;  %1777 = vrot.lane.b32.xlu1 %v1656_v49, %s3760_s15  ;;  %v1658_v62 = vcombine.low %v4556_v36, %v4556_v36 }
 0x548   : > { %1661 = vrot.lane.b32.xlu0 %v4505_v5, %s3765_s14  ;;  %1738 = vrot.lane.b32.xlu1 %v1656_v49, %s3761_s16 }
 0x54c   : > { %1720 = vrot.lane.b32.xlu0 %v4517_v31, %s3763_s21  ;;  %1699 = vrot.lane.b32.xlu1 %v1656_v49, %s3747_s29 }
 0x550   : > { %1681 = vrot.lane.b32.xlu0 %v4517_v31, %s3764_s13  ;;  %1783 = vrot.lane.b32.xlu1 %v4542_v34, %s3760_s15 }
 0x554   : > { %1722 = vrot.lane.b32.xlu1 %v4542_v34, %s3763_s21  ;;  %1801 = vrot.lane.b32.xlu0 %v4542_v34, %s3762_s20 }
 0x558   : > { %1683 = vrot.lane.b32.xlu1 %v4542_v34, %s3764_s13  ;;  %1762 = vrot.lane.b32.xlu0 %v4542_v34, %s3742_s24 }
 0x55c   : > { %1726 = vrot.lane.b32.xlu1 %v4556_v36, %s3763_s21  ;;  %1744 = vrot.lane.b32.xlu0 %v4542_v34, %s3761_s16 }
 0x560   : > { %1687 = vrot.lane.b32.xlu1 %v4556_v36, %s3764_s13  ;;  %1705 = vrot.lane.b32.xlu0 %v4542_v34, %s3747_s29 }
 0x564   : > { %1805 = vrot.lane.b32.xlu0 %v4556_v36, %s3762_s20  ;;  %1803 = vrot.lane.b32.xlu1 %v4568_v51, %s3762_s20  ;;  %s3772_s20 = smov 8  }
 0x568   : > { %1766 = vrot.lane.b32.xlu0 %v4556_v36, %s3742_s24  ;;  %1764 = vrot.lane.b32.xlu1 %v4568_v51, %s3742_s24 }
 0x56c   : > { %1781 = vrot.lane.b32.xlu0 %v1657_v7, %s3760_s15  ;;  %1742 = vrot.lane.b32.xlu1 %v1657_v7, %s3761_s16 }
 0x570   : > { %1724 = vrot.lane.b32.xlu0 %v4568_v51, %s3763_s21  ;;  %1703 = vrot.lane.b32.xlu1 %v1657_v7, %s3747_s29 }
 0x574   : > { %1685 = vrot.lane.b32.xlu0 %v4568_v51, %s3764_s13  ;;  %1663 = vrot.lane.b32.xlu1 %v1657_v7, %s3765_s14  ;;  %s3773_s13 = smov 16  }
 0x578   : > { %1785 = vrot.lane.b32.xlu0 %v1658_v62, %s3760_s15  ;;  %1746 = vrot.lane.b32.xlu1 %v1658_v62, %s3761_s16  ;;  %s3774_s15 = smov 24   ;;  %s3775_s16 = smov 40  }
 0x57c   : > { %1665 = vrot.lane.b32.xlu0 %v4542_v34, %s3765_s14  ;;  %1707 = vrot.lane.b32.xlu1 %v1658_v62, %s3747_s29 }
 0x580   : > { %1659 = vrot.lane.b32.xlu0 %v1656_v49, %s3765_s14  ;;  %1667 = vrot.lane.b32.xlu1 %v1658_v62, %s3765_s14  ;;  %s3771_s14 = smov 36  }
 0x584   : > { %1836 = vperm.xlu1 %3717, %v1833_v35  }
 0x5a6   : > { %v1759_v14 = vpop.permute.xlu0 %1758  ;;  %v1780_v18 = vpop.permute.xlu1 %1779 }
 0x5aa   : > { %v1741_v38 = vpop.permute.xlu0 %1740  ;;  %v1798_v39 = vpop.permute.xlu1 %1797 }
 0x5ae   : > { %v1719_v17 = vpop.permute.xlu0 %1718  ;;  %v1800_v40 = vpop.permute.xlu1 %1799 }
 0x5af   : > { %v1808_v45 = vsel %vm1807_vm14, %v1798_v39, %v1800_v40 }
 0x5b2   : > { %v1702_v41 = vpop.permute.xlu0 %1701  ;;  %v1761_v16 = vpop.permute.xlu1 %1760 }
 0x5b3   : > { %v1768_v21 = vsel %vm613_vm3, %v1759_v14, %v1761_v16 }
 0x5b6   : > { %v1680_v6 = vpop.permute.xlu0 %1679  ;;  %v1778_v37 = vpop.permute.xlu1 %1777 }
 0x5b7   : > { %v1788_v60 = vsel %vm1787_vm15, %v1778_v37, %v1780_v18 }
 0x5b8   : > { %v1827_v29 = vsel %vm658_vm1, %v1768_v21, %v1788_v60 }
 0x5ba   : > { %v4600_v27 = vpop.permute.xlu0 %1661  ;;  %v1739_v13 = vpop.permute.xlu1 %1738 }
 0x5bb   : > { %v1749_v20 = vsel %vm1748_vm0, %v1739_v13, %v1741_v38 }
 0x5be   : > { %v1721_v52 = vpop.permute.xlu0 %1720  ;;  %v1700_v4 = vpop.permute.xlu1 %1699 }
 0x5bf   : > { %v1729_v23 = vsel %vm1728_vm2, %v1719_v17, %v1721_v52 }
 0x5c0   : > { %v1822_v14 = vsel %vm658_vm1, %v1729_v23, %v1749_v20 }
 0x5c2   : > { %v1682_v54 = vpop.permute.xlu0 %1681  ;;  %v4602_v12 = vpop.permute.xlu1 %1783 }
 0x5c3   : > { %v1690_v0 = vsel %vm1689_vm4, %v1680_v6, %v1682_v54 }
 0x5c6   : > { %v1802_v44 = vpop.permute.xlu0 %1801  ;;  %v4604_v22 = vpop.permute.xlu1 %1722 }
 0x5c7   : > { %v1809_v1 = vsel %vm1807_vm14, %v1800_v40, %v1802_v44  ;;  %v1730_v33 = vsel %vm1728_vm2, %v1721_v52, %v4604_v22 }
 0x5c8   : > { %3475 = vmatprep.subr.msk.mxu0 %vm658_vm1, %v1809_v1 }
 0x5c9   : > { %3476 = vmatpush1.msk.msra.mxu0 %vm658_vm1, %v1808_v45 }
 0x5ca   : > { %v1763_v46 = vpop.permute.xlu0 %1762  ;;  %v4610_v19 = vpop.permute.xlu1 %1683 }
 0x5cb   : > { %v1769_v8 = vsel %vm613_vm3, %v1761_v16, %v1763_v46  ;;  %v1691_v62 = vsel %vm1689_vm4, %v1682_v54, %v4610_v19 }
 0x5ce   : > { %v4612_v48 = vpop.permute.xlu0 %1744  ;;  %v4614_v42 = vpop.permute.xlu1 %1726 }
 0x5d2   : > { %v4616_v47 = vpop.permute.xlu0 %1705  ;;  %v4618_v50 = vpop.permute.xlu1 %1687 }
 0x5d6   : > { %v4620_v53 = vpop.permute.xlu0 %1805  ;;  %v1804_v55 = vpop.permute.xlu1 %1803 }
 0x5d7   : > { %v1810_v56 = vsel %vm1807_vm14, %v1802_v44, %v1804_v55  ;;  %v1811_v57 = vsel %vm1807_vm14, %v1804_v55, %v4620_v53 }
 0x5d8   : > { %3478 = vmatprep.subr.msk.mxu1 %vm658_vm1, %v1811_v57 }
 0x5d9   : > { %3479 = vmatpush1.msk.msra.mxu1 %vm658_vm1, %v1810_v56 }
 0x5da   : > { %v4627_v58 = vpop.permute.xlu0 %1766  ;;  %v1765_v59 = vpop.permute.xlu1 %1764 }
 0x5db   : > { %v1771_v52 = vsel %vm613_vm3, %v1765_v59, %v4627_v58  ;;  %v1770_v44 = vsel %vm613_vm3, %v1763_v46, %v1765_v59 }
 0x5de   : > { %v1782_v61 = vpop.permute.xlu0 %1781  ;;  %v1743_v63 = vpop.permute.xlu1 %1742 }
 0x5df   : > { %v1789_v15 = vsel %vm1787_vm15, %v1780_v18, %v1782_v61  ;;  %v1750_v10 = vsel %vm1748_vm0, %v1741_v38, %v1743_v63  ;;  %v1709_v18 = vsel %vm553_vm6, %v1700_v4, %v1702_v41  ;;  %v1751_v56 = vsel %vm1748_vm0, %v1743_v63, %v4612_v48 }
 0x5e0   : > { %v1828_v24 = vsel %vm658_vm1, %v1769_v8, %v1789_v15  ;;  %v1823_v7 = vsel %vm658_vm1, %v1730_v33, %v1750_v10  ;;  %v1817_v39 = vsel %vm658_vm1, %v1690_v0, %v1709_v18 }
 0x5e1   : > { %1876 = vmatprep.subr.mxu0 %v1828_v24 }
 0x5e2   : > { %v1725_v49 = vpop.permute.xlu0 %1724  ;;  %1877 = vmatpush1.msra.mxu0 %v1827_v29  ;;  %v1704_v2 = vpop.permute.xlu1 %1703 }
 0x5e3   : > { %v1710_v35 = vsel %vm553_vm6, %v1702_v41, %v1704_v2  ;;  %1878 = vmatprep.subr.mxu0 %v1823_v7  ;;  %v1790_v41 = vsel %vm1787_vm15, %v1782_v61, %v4602_v12  ;;  %v1732_v45 = vsel %vm1728_vm2, %v1725_v49, %v4614_v42 }
 0x5e4   : > { %1879 = vmatpush1.msra.mxu0 %v1822_v14  ;;  %v1818_v38 = vsel %vm658_vm1, %v1691_v62, %v1710_v35  ;;  %v1829_v55 = vsel %vm658_vm1, %v1770_v44, %v1790_v41 }
 0x5e5   : > { %1880 = vmatprep.subr.mxu0 %v1818_v38 }
 0x5e6   : > { %v1686_v17 = vpop.permute.xlu0 %1685  ;;  %1881 = vmatpush1.msra.mxu0 %v1817_v39  ;;  %v1664_v40 = vpop.permute.xlu1 %1663 }
 0x5e7   : > { %v1671_v16 = vsel %vm1669_vm9, %v4600_v27, %v1664_v40 }
 0x5e8   : > { %v1813_v6 = vsel %vm658_vm1, %v4517_v31, %v1671_v16  ;;  %v1731_v31 = vsel %vm1728_vm2, %v4604_v22, %v1725_v49  ;;  %v1693_v22 = vsel %vm1689_vm4, %v1686_v17, %v4618_v50 }
 0x5e9   : > { %1882 = vmatprep.subr.mxu0 %v1813_v6  ;;  %v1824_v61 = vsel %vm658_vm1, %v1731_v31, %v1751_v56 }
 0x5ea   : > { %v1786_v37 = vpop.permute.xlu0 %1785  ;;  %v1747_v13 = vpop.permute.xlu1 %1746 }
 0x5eb   : > { %v1791_v4 = vsel %vm1787_vm15, %v4602_v12, %v1786_v37  ;;  %v1752_v54 = vsel %vm1748_vm0, %v4612_v48, %v1747_v13  ;;  %v1692_v12 = vsel %vm1689_vm4, %v4610_v19, %v1686_v17  ;;  %v1711_v48 = vsel %vm553_vm6, %v1704_v2, %v4616_v47 }
 0x5ec   : > { %v1830_v1 = vsel %vm658_vm1, %v1771_v52, %v1791_v4  ;;  %v1825_v59 = vsel %vm658_vm1, %v1732_v45, %v1752_v54  ;;  %v1819_v63 = vsel %vm658_vm1, %v1692_v12, %v1711_v48  ;;  %v2556_v48 = vld [vmem:[%s3853_s22] sm:$0xff]  ;;  %vm5139_vm4 = vcmask 760832  }
 0x5ed   : > { %1947 = vmatprep.subr.mxu1 %v1830_v1 }
 0x5ee   : > { %v1666_v57 = vpop.permute.xlu0 %1665  ;;  %1948 = vmatpush1.msra.mxu1 %v1829_v55  ;;  %v1708_v46 = vpop.permute.xlu1 %1707 }
 0x5ef   : > { %v1712_v60 = vsel %vm553_vm6, %v4616_v47, %v1708_v46  ;;  %1949 = vmatprep.subr.mxu1 %v1825_v59  ;;  %v1672_v8 = vsel %vm1669_vm9, %v1664_v40, %v1666_v57  ;;  %v1832_v47 = vld [vmem:[%s5110_s5] sm:$0xf] }
 0x5f0   : > { %1950 = vmatpush1.msra.mxu1 %v1824_v61  ;;  %v1820_v19 = vsel %vm658_vm1, %v1693_v22, %v1712_v60  ;;  %v1814_v29 = vsel %vm658_vm1, %v4542_v34, %v1672_v8  ;;  %v1826_v34 = vsel %vm658_vm1, %v4614_v42, %v1747_v13 }
 0x5f1   : > { %1951 = vmatprep.subr.mxu1 %v1820_v19  ;;  %v2562_v19 = vcombine.high %v2556_v48, %v2556_v48 }
 0x5f2   : > { %v1660_v15 = vpop.permute.xlu0 %1659  ;;  %1952 = vmatpush1.msra.mxu1 %v1819_v63  ;;  %v1668_v10 = vpop.permute.xlu1 %1667  ;;  %v4822_v63 = vld [vmem:[%s3853_s22 + $0x8] sm:$0xff] }
 0x5f3   : > { %v1670_v21 = vsel %vm1669_vm9, %v1660_v15, %v4600_v27  ;;  %v1673_v23 = vsel %vm1669_vm9, %v1666_v57, %v1668_v10  ;;  %v1816_v27 = vsel %vm658_vm1, %v4556_v36, %v1668_v10  ;;  %vm5140_vm9 = vcmask 752640  }
 0x5f4   : > { %v1812_v24 = vsel %vm658_vm1, %v4505_v5, %v1670_v21  ;;  %v1815_v33 = vsel %vm658_vm1, %v4568_v51, %v1673_v23  ;;  %v1831_v5 = vsel %vm658_vm1, %v4627_v58, %v1786_v37  ;;  %v1821_v51 = vsel %vm658_vm1, %v4618_v50, %v1708_v46 }
 0x5f5   : > { %1883 = vmatpush1.msra.mxu0 %v1812_v24  ;;  %1953 = vmatprep.subr.mxu1 %v1815_v33 }
 0x5f6   : > { %3477 = vmatmul.mubr.msk.f32.vlgmr.msra.gmra.mxu0 %vm797_vm10, %v1832_v47  ;;  %1954 = vmatpush1.msra.mxu1 %v1814_v29 }
 0x5f7   : > { %3591 = vmatprep.subr.mxu0 %v3750_v32  ;;  %3480 = vmatmul.mubr.msk.f32.vlgmr.msra.gmra.mxu1 %vm797_vm10, %v1832_v47 }
 0x5f8   : > { %3592 = vmatpush3.msk.msra.mxu0 %vm658_vm1, %v4620_v53  ;;  %3601 = vmatprep.mubr.msk.f32.mxu0 %vm3752_vm11, %v3750_v32 }
 0x5f9   : > { %3593 = vmatprep.subr.mxu0 %v3750_v32  ;;  %2477 = vmatprep.mubr.f32.mxu1 %v3750_v32 }
 0x5fa   : > { %3594 = vmatpush3.msra.mxu0 %v1831_v5 }
 0x5fb   : > { %3595 = vmatprep.subr.mxu0 %v3750_v32 }
 0x5fc   : > { %3596 = vmatpush3.msra.mxu0 %v1826_v34 }
 0x5fd   : > { %3597 = vmatprep.subr.mxu0 %v3750_v32 }
 0x5fe   : > { %3598 = vmatpush3.msra.mxu0 %v1821_v51 }
 0x5ff   : > { %3599 = vmatprep.subr.mxu0 %v3750_v32  ;;  %v1837_v42 = vpop.permute.xlu1 %1836 }
 0x600   : > { %3600 = vmatpush3.msra.mxu0 %v1816_v27 }
 0x601   : > { %3602 = vmatmul.mubr.msk.f32.vlgmr.msra.gmra.mxu0 %vm797_vm10, %v1832_v47 }
 0x602   : > { %2548 = vmatprep.mubr.f32.mxu0 %v3750_v32 }
 0x6b6   : > { %v1918_v53 = vpop.f32.mrf.mxu0 }
 0x6b7   : > { %v1919_v58 = vadd.f32 %v1918_v53, %v1837_v42  ;;  %v1989_v20 = vpop.f32.mrf.mxu1 }
 0x6b8   : > { %v1990_v0 = vadd.f32 %v1989_v20, %v1837_v42  ;;  %v1920_v49 = vpop.f32.mrf.mxu0 }
 0x6b9   : > { %vm2064_vm12 = vcmp.gt.f32.partialorder %v1919_v58, 0.0  ;;  %v2069_v50 = vmul.f32 0.3, %v1919_v58  ;;  %v1921_v2 = vadd.f32 %v1920_v49, %v1837_v42  ;;  %v1991_v7 = vpop.f32.mrf.mxu1 }
 0x6ba   : > { %vm2066_vm13 = vcmp.gt.f32.partialorder %v1990_v0, 0.0  ;;  %v2071_v62 = vmul.f32 0.3, %v1990_v0  ;;  %v1992_v36 = vadd.f32 %v1991_v7, %v1837_v42 }
 0x6bb   : > { %v2074_v35 = vsel %vm2064_vm12, %v1919_v58, %v2069_v50  ;;  %vm2065_vm14 = vcmp.gt.f32.partialorder %v1921_v2, 0.0  ;;  %v2070_v14 = vmul.f32 0.3, %v1921_v2  ;;  %vm5141_vm12 = vcmask 1031168  }
 0x6bc   : > { %v2076_v18 = vsel %vm2066_vm13, %v1990_v0, %v2071_v62  ;;  %vm2067_vm15 = vcmp.gt.f32.partialorder %v1992_v36, 0.0  ;;  %v2072_v38 = vmul.f32 0.3, %v1992_v36  ;;  %v2079_v17 = vmul.f32 %v4187_v25, %v2074_v35 }
 0x6bd   : > { %v2075_v39 = vsel %vm2065_vm14, %v1921_v2, %v2070_v14  ;;  %v2081_v6 = vmul.f32 %v4169_v9, %v2076_v18  ;;  %vm5142_vm13 = vcmask 1039360  }
 0x6be   : > { %v2080_v40 = vmul.f32 %v4192_v30, %v2075_v39  ;;  %v2077_v16 = vsel %vm2067_vm15, %v1992_v36, %v2072_v38 }
 0x6bf   : > { %v2082_v41 = vmul.f32 %v4172_v11, %v2077_v16 }
 0x6c0   : > { %v2089_v37 = vcombine.low %v2079_v17, %v2080_v40 }
 0x6c1   : > { %v2060_v13 = vpop.f32.mrf.mxu0  ;;  %v2090_v52 = vcombine.low %v2081_v6, %v2082_v41 }
 0x6c2   : > { %v2061_v4 = vadd.f32 %v2060_v13, %v1837_v42  ;;  %2091 = vrot.lane.b32.xlu0 %v2089_v37, %s3753_s19 }
 0x6c3   : > { %2093 = vrot.lane.b32.xlu1 %v2090_v52, %s3753_s19  ;;  %v3603_v54 = vpop.f32.mrf.mxu0 }
 0x6c4   : > { %vm2068_vm0 = vcmp.gt.f32.partialorder %v2061_v4, 0.0  ;;  %v2073_v44 = vmul.f32 0.3, %v2061_v4 }
 0x6c6   : > { %v2078_v31 = vsel %vm2068_vm0, %v2061_v4, %v2073_v44 }
 0x6c7   : > { %v2083_v25 = vmul.f32 %v4202_v3, %v2078_v31 }
 0x6c9   : > { %2095 = vrot.lane.b32.xlu0 %v2083_v25, %s3753_s19  ;;  %s3767_s19 = smov 52  }
 0x734   : > { %v2092_v30 = vpop.permute.xlu0 %2091 }
 0x735   : > { %v2097_v9 = vrot.slane %v2092_v30, 4  ;;  %v2094_v1 = vpop.permute.xlu1 %2093 }
 0x736   : > { %v2098_v11 = vrot.slane %v2094_v1, 4 }
 0x737   : > { %v2099_v45 = vsel %vm1058_vm5, %v2097_v9, %v2092_v30 }
 0x738   : > { %2106 = vst.msk [vmem:[#allocation2] sm:$0xff] %vm4206_vm7, %v2099_v45  ;;  %v2100_v55 = vsel %vm658_vm1, %v2097_v9, %v2098_v11  ;;  %vm5137_vm7 = vcmask 482304  }
 0x739   : > { %v4730_v56 = vsel %vm1058_vm5, %v2100_v55, %v2094_v1  ;;  %vm5144_vm15 = vmmov %vm5137_vm7 }
 0x73a   : > { %v4786_v59 = vcombine.high %v4730_v56, %v4730_v56  ;;  %v2120_v22 = vcombine.low %v4730_v56, %v4730_v56 }
 0x73b   : > { %v2096_v12 = vpop.permute.xlu0 %2095 }
 0x73c   : > { %v2102_v57 = vsel %vm1058_vm5, %v2098_v11, %v2096_v12  ;;  %vm5136_vm5 = vcmask 474112  }
 0x73d   : > { %2108 = vst.msk [vmem:[#allocation2 + $0x10] sm:$0xf] %vm1071_vm8, %v2102_v57  ;;  %vm5138_vm8 = vmmov %vm5136_vm5 }
 0x73e   : > { %vm5143_vm14 = vmmov %vm5136_vm5 }
 0x73f   : > { %v4734_v3 = vld [vmem:[#allocation2] sm:$0xff]  ;;  %vm5145_vm0 = vmmov %vm5136_vm5 }
 0x740   : > { %2255 = vrot.lane.b32.xlu0 %v4734_v3, %s3741_s23  ;;  %2238 = vrot.lane.b32.xlu1 %v4734_v3, %s3743_s25  ;;  %v4754_v43 = vcombine.high %v4734_v3, %v4734_v3  ;;  %v2119_v46 = vcombine.low %v4734_v3, %v4734_v3 }
 0x744   : > { %2200 = vrot.lane.b32.xlu0 %v4734_v3, %s3745_s27  ;;  %2217 = vrot.lane.b32.xlu1 %v4734_v3, %s3742_s24  ;;  %v4804_v60 = vld [vmem:[#allocation2 + $0x10] sm:$0xf] }
 0x745   : > { %v2121_v61 = vcombine.low %v4804_v60, %v4804_v60 }
 0x748   : > { %2162 = vrot.lane.b32.xlu0 %v4734_v3, %s3747_s29  ;;  %2179 = vrot.lane.b32.xlu1 %v4734_v3, %s3744_s26 }
 0x74c   : > { %2259 = vrot.lane.b32.xlu0 %v4730_v56, %s3741_s23  ;;  %2141 = vrot.lane.b32.xlu1 %v4734_v3, %s3746_s28 }
 0x750   : > { %2124 = vrot.lane.b32.xlu1 %v4734_v3, %s3748_s30  ;;  %2219 = vrot.lane.b32.xlu0 %v4754_v43, %s3742_s24 }
 0x754   : > { %2236 = vrot.lane.b32.xlu0 %v2119_v46, %s3743_s25  ;;  %2257 = vrot.lane.b32.xlu1 %v4754_v43, %s3741_s23 }
 0x758   : > { %2183 = vrot.lane.b32.xlu0 %v4730_v56, %s3744_s26  ;;  %2221 = vrot.lane.b32.xlu1 %v4730_v56, %s3742_s24 }
 0x75c   : > { %2204 = vrot.lane.b32.xlu0 %v4730_v56, %s3745_s27  ;;  %2242 = vrot.lane.b32.xlu1 %v4730_v56, %s3743_s25 }
 0x760   : > { %2198 = vrot.lane.b32.xlu0 %v2119_v46, %s3745_s27  ;;  %2181 = vrot.lane.b32.xlu1 %v4754_v43, %s3744_s26 }
 0x764   : > { %2145 = vrot.lane.b32.xlu0 %v4730_v56, %s3746_s28  ;;  %2143 = vrot.lane.b32.xlu1 %v4754_v43, %s3746_s28 }
 0x768   : > { %2166 = vrot.lane.b32.xlu0 %v4730_v56, %s3747_s29  ;;  %2128 = vrot.lane.b32.xlu1 %v4730_v56, %s3748_s30 }
 0x76c   : > { %2160 = vrot.lane.b32.xlu0 %v2119_v46, %s3747_s29  ;;  %2261 = vrot.lane.b32.xlu1 %v4786_v59, %s3741_s23 }
 0x770   : > { %2122 = vrot.lane.b32.xlu0 %v2119_v46, %s3748_s30  ;;  %2185 = vrot.lane.b32.xlu1 %v4786_v59, %s3744_s26 }
 0x774   : > { %2223 = vrot.lane.b32.xlu0 %v4786_v59, %s3742_s24  ;;  %2202 = vrot.lane.b32.xlu1 %v2120_v22, %s3745_s27 }
 0x778   : > { %2240 = vrot.lane.b32.xlu0 %v2120_v22, %s3743_s25  ;;  %2147 = vrot.lane.b32.xlu1 %v4786_v59, %s3746_s28 }
 0x77c   : > { %2126 = vrot.lane.b32.xlu0 %v2120_v22, %s3748_s30  ;;  %2164 = vrot.lane.b32.xlu1 %v2120_v22, %s3747_s29 }
 0x780   : > { %2225 = vrot.lane.b32.xlu0 %v4804_v60, %s3742_s24  ;;  %2263 = vrot.lane.b32.xlu1 %v4804_v60, %s3741_s23  ;;  %s3776_s23 = smov 32  }
 0x784   : > { %2187 = vrot.lane.b32.xlu0 %v4804_v60, %s3744_s26  ;;  %2244 = vrot.lane.b32.xlu1 %v2121_v61, %s3743_s25  ;;  %s3777_s25 = smov 56   ;;  %s3778_s26 = smov 48  }
 0x788   : > { %2149 = vrot.lane.b32.xlu0 %v4804_v60, %s3746_s28  ;;  %2206 = vrot.lane.b32.xlu1 %v2121_v61, %s3745_s27  ;;  %s3453_s27 = sshll.u32 %s5182_s18, 3 }
 0x78c   : > { %2130 = vrot.lane.b32.xlu0 %v2121_v61, %s3748_s30  ;;  %2168 = vrot.lane.b32.xlu1 %v2121_v61, %s3747_s29  ;;  %s384_s29 = scalar_lea.vmem %s5116_s11, %s3453_s27 }
 0x790   : > { %2566 = vrot.lane.b32.xlu0 %v2562_v19, %s3763_s21  ;;  %2568 = vrot.lane.b32.xlu1 %v4822_v63, %s3763_s21 }
 0x794   : > { %2564 = vrot.lane.b32.xlu0 %v2556_v48, %s3763_s21 }
 0x7b2   : > { %v2239_v8 = vpop.permute.xlu1 %2238  ;;  %v2256_v15 = vpop.permute.xlu0 %2255 }
 0x7b6   : > { %v2218_v10 = vpop.permute.xlu1 %2217  ;;  %v2201_v21 = vpop.permute.xlu0 %2200 }
 0x7ba   : > { %v2180_v23 = vpop.permute.xlu1 %2179  ;;  %v4828_v47 = vpop.permute.xlu0 %2162 }
 0x7be   : > { %v2142_v24 = vpop.permute.xlu1 %2141  ;;  %v2260_v33 = vpop.permute.xlu0 %2259 }
 0x7c2   : > { %v4830_v29 = vpop.permute.xlu1 %2124  ;;  %v2220_v5 = vpop.permute.xlu0 %2219 }
 0x7c3   : > { %v2227_v27 = vsel %vm613_vm3, %v2218_v10, %v2220_v5 }
 0x7c6   : > { %v2258_v34 = vpop.permute.xlu1 %2257  ;;  %v2237_v51 = vpop.permute.xlu0 %2236 }
 0x7c7   : > { %v2266_v42 = vsel %vm5136_vm5, %v2258_v34, %v2260_v33  ;;  %v2246_v53 = vsel %vm5137_vm7, %v2237_v51, %v2239_v8  ;;  %v2265_v49 = vsel %vm5138_vm8, %v2256_v15, %v2258_v34  ;;  %vm5146_vm5 = vmmov %vm5137_vm7 }
 0x7c8   : > { %2358 = vrot.lane.b32.xlu1 %v2266_v42, %s3749_s12  ;;  %v2284_v58 = vsel %vm658_vm1, %v2227_v27, %v2246_v53  ;;  %vm5147_vm7 = vmmov %vm5140_vm9 }
 0x7c9   : > { %2346 = vrot.lane.b32.xlu0 %v2284_v58, %s3749_s12  ;;  %vm5148_vm8 = vmmov %vm5147_vm7 }
 0x7ca   : > { %v2222_v20 = vpop.permute.xlu1 %2221  ;;  %v2184_v0 = vpop.permute.xlu0 %2183 }
 0x7cb   : > { %v2228_v46 = vsel %vm613_vm3, %v2220_v5, %v2222_v20 }
 0x7cc   : > { %2356 = vrot.lane.b32.xlu1 %v2265_v49, %s3749_s12 }
 0x7ce   : > { %v4840_v50 = vpop.permute.xlu1 %2242  ;;  %v4842_v2 = vpop.permute.xlu0 %2204 }
 0x7d2   : > { %v2182_v7 = vpop.permute.xlu1 %2181  ;;  %v2199_v62 = vpop.permute.xlu0 %2198 }
 0x7d3   : > { %v2189_v36 = vsel %vm5139_vm4, %v2180_v23, %v2182_v7  ;;  %v2208_v35 = vsel %vm5140_vm9, %v2199_v62, %v2201_v21  ;;  %vm5149_vm9 = vmmov %vm5139_vm4 }
 0x7d4   : > { %v2279_v14 = vsel %vm658_vm1, %v2189_v36, %v2208_v35 }
 0x7d5   : > { %2336 = vrot.lane.b32.xlu1 %v2279_v14, %s3749_s12 }
 0x7d6   : > { %v2144_v18 = vpop.permute.xlu1 %2143  ;;  %v2146_v38 = vpop.permute.xlu0 %2145 }
 0x7d7   : > { %v2151_v6 = vsel %vm5141_vm12, %v2142_v24, %v2144_v18 }
 0x7da   : > { %v4848_v39 = vpop.permute.xlu1 %2128  ;;  %v4850_v17 = vpop.permute.xlu0 %2166 }
 0x7de   : > { %v2262_v40 = vpop.permute.xlu1 %2261  ;;  %v2161_v16 = vpop.permute.xlu0 %2160 }
 0x7df   : > { %v2170_v41 = vsel %vm553_vm6, %v2161_v16, %v4828_v47  ;;  %v2267_v54 = vsel %vm5143_vm14, %v2260_v33, %v2262_v40  ;;  %vm5151_vm14 = vcmask 1039360  }
 0x7e0   : > { %v2274_v37 = vsel %vm658_vm1, %v2151_v6, %v2170_v41 }
 0x7e1   : > { %2326 = vrot.lane.b32.xlu0 %v2274_v37, %s3749_s12  ;;  %v2563_v37 = vcombine.high %v4822_v63, %v4822_v63 }
 0x7e2   : > { %v4857_v13 = vpop.permute.xlu1 %2185  ;;  %v2123_v52 = vpop.permute.xlu0 %2122 }
 0x7e3   : > { %v2132_v4 = vsel %vm5142_vm13, %v2123_v52, %v4830_v29  ;;  %v2191_v10 = vsel %vm5149_vm9, %v2184_v0, %v4857_v13  ;;  %vm5150_vm13 = vmmov %vm5141_vm12  ;;  %v2290_v52 = vld [vmem:[%s5113_s8] sm:$0xff] }
 0x7e4   : > { %v2269_v44 = vsel %vm658_vm1, %v4734_v3, %v2132_v4  ;;  %v2152_v51 = vsel %vm5150_vm13, %v2144_v18, %v2146_v38 }
 0x7e5   : > { %2360 = vrot.lane.b32.xlu0 %v2267_v54, %s3749_s12  ;;  %2316 = vrot.lane.b32.xlu1 %v2269_v44, %s3749_s12 }
 0x7e6   : > { %v2203_v31 = vpop.permute.xlu1 %2202  ;;  %v2224_v25 = vpop.permute.xlu0 %2223 }
 0x7e7   : > { %v2229_v3 = vsel %vm613_vm3, %v2222_v20, %v2224_v25  ;;  %v2209_v61 = vsel %vm5147_vm7, %v2201_v21, %v2203_v31  ;;  %v2210_v19 = vsel %vm5148_vm8, %v2203_v31, %v4842_v2  ;;  %vm5158_vm8 = vcmask 982016  }
 0x7e8   : > { %v2281_v33 = vsel %vm658_vm1, %v2191_v10, %v2210_v19 }
 0x7ea   : > { %v2148_v30 = vpop.permute.xlu1 %2147  ;;  %v2241_v9 = vpop.permute.xlu0 %2240 }
 0x7eb   : > { %v2248_v45 = vsel %vm5144_vm15, %v2241_v9, %v4840_v50  ;;  %v2247_v12 = vsel %vm5146_vm5, %v2239_v8, %v2241_v9  ;;  %v2190_v8 = vsel %vm5139_vm4, %v2182_v7, %v2184_v0  ;;  %v2153_v34 = vsel %vm5141_vm12, %v2146_v38, %v2148_v30  ;;  %vm5152_vm15 = vmmov %vm5151_vm14 }
 0x7ec   : > { %v2286_v22 = vsel %vm658_vm1, %v2229_v3, %v2248_v45  ;;  %v2285_v48 = vsel %vm658_vm1, %v2228_v46, %v2247_v12  ;;  %v2280_v24 = vsel %vm658_vm1, %v2190_v8, %v2209_v61 }
 0x7ee   : > { %v2165_v1 = vpop.permute.xlu1 %2164  ;;  %v2127_v57 = vpop.permute.xlu0 %2126 }
 0x7ef   : > { %v2172_v21 = vsel %vm553_vm6, %v2165_v1, %v4850_v17  ;;  %v2171_v5 = vsel %vm553_vm6, %v4828_v47, %v2165_v1  ;;  %v2133_v53 = vsel %vm5151_vm14, %v4830_v29, %v2127_v57  ;;  %v2134_v20 = vsel %vm5152_vm15, %v2127_v57, %v4848_v39 }
 0x7f0   : > { %v2276_v42 = vsel %vm658_vm1, %v2153_v34, %v2172_v21  ;;  %v2275_v58 = vsel %vm658_vm1, %v2152_v51, %v2171_v5  ;;  %v2270_v0 = vsel %vm658_vm1, %v4754_v43, %v2133_v53  ;;  %v2271_v49 = vsel %vm658_vm1, %v4730_v56, %v2134_v20 }
 0x7f2   : > { %v2264_v11 = vpop.permute.xlu1 %2263  ;;  %v2226_v23 = vpop.permute.xlu0 %2225 }
 0x7f3   : > { %v2268_v55 = vsel %vm5145_vm0, %v2262_v40, %v2264_v11  ;;  %2364 = vrot.lane.b32.xlu1 %v2264_v11, %s3749_s12  ;;  %vm5153_vm0 = vmmov %vm5146_vm5  ;;  %v2230_v43 = vsel %vm613_vm3, %v2224_v25, %v2226_v23 }
 0x7f4   : > { %2362 = vrot.lane.b32.xlu0 %v2268_v55, %s3749_s12  ;;  %vm5154_vm5 = vmmov %vm5147_vm7 }
 0x7f5   : > { %vm5155_vm7 = vmmov %vm5141_vm12 }
 0x7f6   : > { %v2245_v15 = vpop.permute.xlu1 %2244  ;;  %v2188_v47 = vpop.permute.xlu0 %2187  ;;  %vm5156_vm3 = vmmov %vm5139_vm4 }
 0x7f7   : > { %2350 = vrot.lane.b32.xlu1 %v2286_v22, %s3749_s12  ;;  %v2288_v29 = vsel %vm658_vm1, %v2226_v23, %v2245_v15  ;;  %v2249_v35 = vsel %vm5153_vm0, %v4840_v50, %v2245_v15  ;;  %v2192_v16 = vsel %vm5156_vm3, %v4857_v13, %v2188_v47  ;;  %vm5159_vm4 = vmmov %vm5158_vm8 }
 0x7f8   : > { %2348 = vrot.lane.b32.xlu0 %v2285_v48, %s3749_s12  ;;  %v2287_v18 = vsel %vm658_vm1, %v2230_v43, %v2249_v35  ;;  %vm5160_vm9 = vmmov %vm5159_vm4 }
 0x7f9   : > { %vm5161_vm12 = vmmov %vm5159_vm4 }
 0x7fa   : > { %v2207_v27 = vpop.permute.xlu1 %2206  ;;  %v2150_v62 = vpop.permute.xlu0 %2149  ;;  %vm5162_vm13 = vmmov %vm5159_vm4 }
 0x7fb   : > { %2338 = vrot.lane.b32.xlu1 %v2280_v24, %s3749_s12  ;;  %v2283_v14 = vsel %vm658_vm1, %v2188_v47, %v2207_v27  ;;  %v2211_v38 = vsel %vm5154_vm5, %v4842_v2, %v2207_v27  ;;  %v2154_v50 = vsel %vm5155_vm7, %v2148_v30, %v2150_v62  ;;  %vm5164_vm15 = vmmov %vm5159_vm4  ;;  %v2289_v27 = vld [vmem:[%s5112_s7] sm:$0xff] }
 0x7fc   : > { %2340 = vrot.lane.b32.xlu0 %v2281_v33, %s3749_s12  ;;  %v2282_v41 = vsel %vm658_vm1, %v2192_v16, %v2211_v38  ;;  %vm5165_vm0 = vmmov %vm5159_vm4 }
 0x7fd   : > { %vm5166_vm5 = vmmov %vm5165_vm0 }
 0x7fe   : > { %v2169_v7 = vpop.permute.xlu1 %2168  ;;  %v2131_v40 = vpop.permute.xlu0 %2130  ;;  %vm5167_vm7 = vmmov %vm5165_vm0 }
 0x7ff   : > { %2330 = vrot.lane.b32.xlu1 %v2276_v42, %s3749_s12  ;;  %v2278_v36 = vsel %vm658_vm1, %v2150_v62, %v2169_v7  ;;  %v2173_v56 = vsel %vm553_vm6, %v4850_v17, %v2169_v7  ;;  %vm5157_vm6 = vmmov %vm5151_vm14  ;;  %v2273_v13 = vsel %vm658_vm1, %v4804_v60, %v2131_v40 }
 0x800   : > { %2328 = vrot.lane.b32.xlu0 %v2275_v58, %s3749_s12  ;;  %v2277_v6 = vsel %vm658_vm1, %v2154_v50, %v2173_v56  ;;  %v2135_v17 = vsel %vm5157_vm6, %v4848_v39, %v2131_v40  ;;  %v2558_v39 = vld [vmem:[%s3853_s22 + $0x10] sm:$0xf]  ;;  %vm5163_vm14 = vmmov %vm5159_vm4 }
 0x801   : > { %v2272_v2 = vsel %vm658_vm1, %v4786_v59, %v2135_v17  ;;  %v2736_v59 = vld [vmem:[%s5115_s10] sm:$0xff]  ;;  %vm5168_vm3 = vmmov %vm5165_vm0 }
 0x802   : > { %v2567_v60 = vpop.permute.xlu0 %2566  ;;  %v4949_v4 = vpop.permute.xlu1 %2568  ;;  %vm5169_vm6 = vmmov %vm5165_vm0 }
 0x803   : > { %2318 = vrot.lane.b32.xlu1 %v2270_v0, %s3749_s12  ;;  %v2575_v53 = vsel %vm1728_vm2, %v2567_v60, %v4949_v4  ;;  %v2555_v0 = vld [vmem:[%s5114_s9] sm:$0xff] }
 0x804   : > { %2320 = vrot.lane.b32.xlu0 %v2271_v49, %s3749_s12 }
 0x806   : > { %v2565_v63 = vpop.permute.xlu0 %2564 }
 0x807   : > { %2354 = vrot.lane.b32.xlu1 %v2288_v29, %s3749_s12  ;;  %v2574_v20 = vsel %vm1728_vm2, %v2565_v63, %v2567_v60 }
 0x808   : > { %2334 = vrot.lane.b32.xlu0 %v2278_v36, %s3749_s12 }
 0x80b   : > { %2344 = vrot.lane.b32.xlu1 %v2283_v14, %s3749_s12 }
 0x80c   : > { %2352 = vrot.lane.b32.xlu0 %v2287_v18, %s3749_s12 }
 0x80f   : > { %2332 = vrot.lane.b32.xlu1 %v2277_v6, %s3749_s12 }
 0x810   : > { %2342 = vrot.lane.b32.xlu0 %v2282_v41, %s3749_s12 }
 0x813   : > { %2322 = vrot.lane.b32.xlu1 %v2272_v2, %s3749_s12 }
 0x814   : > { %2324 = vrot.lane.b32.xlu0 %v2273_v13, %s3749_s12 }
 0x817   : > { %2570 = vrot.lane.b32.xlu1 %v2563_v37, %s3763_s21  ;;  %v2747_v37 = vshrl.u32 %v385_v26, 7 }
 0x818   : > { %2572 = vrot.lane.b32.xlu0 %v2558_v39, %s3763_s21  ;;  %v2749_v39 = vmul.u32 2, %v4121_v28  ;;  %s3770_s21 = smov 104  }
 0x819   : > { %v2748_v13 = vadd.s32 8, %v2747_v37 }
 0x81b   : > { %2293 = vperm.xlu1 %3717, %v2290_v52  }
 0x81c   : > { %2739 = vperm.xlu0 %3718, %v2736_v59   ;;  %v3766_v59 = vmov 1.0  }
 0x83a   : > { %v2359_v44 = vpop.permute.xlu1 %2358 }
 0x83b   : > { %v2347_v54 = vpop.permute.xlu0 %2346 }
 0x83e   : > { %v2357_v25 = vpop.permute.xlu1 %2356 }
 0x83f   : > { %v2382_v1 = vsel %vm5159_vm4, %v2357_v25, %v2359_v44  ;;  %vm5170_vm4 = vmmov %vm5165_vm0 }
 0x847   : > { %v2337_v11 = vpop.permute.xlu1 %2336 }
 0x853   : > { %v2327_v31 = vpop.permute.xlu0 %2326 }
 0x857   : > { %v2361_v30 = vpop.permute.xlu0 %2360  ;;  %v2317_v45 = vpop.permute.xlu1 %2316 }
 0x858   : > { %v2383_v9 = vsel %vm5158_vm8, %v2359_v44, %v2361_v30  ;;  %vm2578_vm8 = vcmask 31744  }
 0x859   : > { %3483 = vmatprep.subr.msk.mxu1 %vm658_vm1, %v2383_v9 }
 0x85a   : > { %3484 = vmatpush1.msk.msra.mxu1 %vm658_vm1, %v2382_v1 }
 0x865   : > { %v2365_v55 = vpop.permute.xlu1 %2364 }
 0x866   : > { %v2363_v12 = vpop.permute.xlu0 %2362 }
 0x867   : > { %v2384_v57 = vsel %vm5160_vm9, %v2361_v30, %v2363_v12  ;;  %v2385_v3 = vsel %vm5161_vm12, %v2363_v12, %v2365_v55  ;;  %vm5171_vm9 = vmmov %vm5165_vm0 }
 0x868   : > { %3486 = vmatprep.subr.msk.mxu0 %vm658_vm1, %v2385_v3  ;;  %vm5172_vm12 = vmmov %vm5165_vm0 }
 0x869   : > { %v2351_v46 = vpop.permute.xlu1 %2350  ;;  %3487 = vmatpush1.msk.msra.mxu0 %vm658_vm1, %v2384_v57 }
 0x86a   : > { %v2349_v22 = vpop.permute.xlu0 %2348 }
 0x86b   : > { %v2378_v61 = vsel %vm5162_vm13, %v2347_v54, %v2349_v22  ;;  %v2379_v48 = vsel %vm5163_vm14, %v2349_v22, %v2351_v46  ;;  %vm5173_vm13 = vmmov %vm5165_vm0 }
 0x86c   : > { %2437 = vmatprep.subr.mxu1 %v2379_v48  ;;  %vm5174_vm14 = vmmov %vm5165_vm0 }
 0x86d   : > { %v2339_v19 = vpop.permute.xlu1 %2338  ;;  %2438 = vmatpush1.msra.mxu1 %v2378_v61 }
 0x86e   : > { %v2341_v15 = vpop.permute.xlu0 %2340  ;;  %v2374_v10 = vsel %vm5165_vm0, %v2337_v11, %v2339_v19 }
 0x86f   : > { %v2375_v8 = vsel %vm5164_vm15, %v2339_v19, %v2341_v15  ;;  %vm5175_vm15 = vmmov %vm5165_vm0 }
 0x870   : > { %2439 = vmatprep.subr.mxu1 %v2375_v8 }
 0x871   : > { %v2331_v23 = vpop.permute.xlu1 %2330  ;;  %2440 = vmatpush1.msra.mxu1 %v2374_v10 }
 0x872   : > { %v2329_v24 = vpop.permute.xlu0 %2328 }
 0x873   : > { %v2370_v21 = vsel %vm5166_vm5, %v2327_v31, %v2329_v24  ;;  %v2371_v33 = vsel %vm5167_vm7, %v2329_v24, %v2331_v23  ;;  %vm5176_vm5 = vmmov %vm5165_vm0  ;;  %vm3382_vm7 = vcmask 195584  }
 0x874   : > { %2441 = vmatprep.subr.mxu1 %v2371_v33 }
 0x875   : > { %v2319_v5 = vpop.permute.xlu1 %2318  ;;  %2442 = vmatpush1.msra.mxu1 %v2370_v21 }
 0x876   : > { %v2321_v34 = vpop.permute.xlu0 %2320  ;;  %v2366_v42 = vsel %vm5169_vm6, %v2317_v45, %v2319_v5  ;;  %vm3386_vm6 = vcmask 326656  }
 0x877   : > { %v2367_v51 = vsel %vm5168_vm3, %v2319_v5, %v2321_v34  ;;  %vm3384_vm3 = vcmask 261120  }
 0x878   : > { %2443 = vmatprep.subr.mxu1 %v2367_v51 }
 0x879   : > { %v2355_v58 = vpop.permute.xlu1 %2354  ;;  %2444 = vmatpush1.msra.mxu1 %v2366_v42 }
 0x87a   : > { %3485 = vmatmul.mubr.msk.f32.vlgmr.msra.gmra.mxu1 %vm797_vm10, %v2289_v27  ;;  %3489 = vmatprep.subr.msk.mxu1 %vm658_vm1, %v2575_v53  ;;  %v2335_v47 = vpop.permute.xlu0 %2334 }
 0x87b   : > { %3490 = vmatpush1.msk.msra.mxu1 %vm658_vm1, %v2574_v20  ;;  %2654 = vmatprep.mubr.f32.mxu1 %v3750_v32 }
 0x87d   : > { %v2345_v49 = vpop.permute.xlu1 %2344 }
 0x87e   : > { %3491 = vmatmul.mubr.msk.f32.vlgmr.msra.gmra.mxu1 %vm2578_vm8, %v2555_v0  ;;  %v2353_v7 = vpop.permute.xlu0 %2352 }
 0x87f   : > { %v2380_v29 = vsel %vm5170_vm4, %v2351_v46, %v2353_v7  ;;  %v2381_v62 = vsel %vm5171_vm9, %v2353_v7, %v2355_v58  ;;  %2725 = vmatprep.mubr.f32.mxu1 %v3750_v32  ;;  %vm3390_vm4 = vcmask 457728   ;;  %vm3392_vm9 = vcmask 523264  }
 0x880   : > { %2508 = vmatprep.subr.mxu0 %v2381_v62 }
 0x881   : > { %v2333_v36 = vpop.permute.xlu1 %2332  ;;  %2509 = vmatpush1.msra.mxu0 %v2380_v29 }
 0x882   : > { %v2343_v35 = vpop.permute.xlu0 %2342  ;;  %v2373_v18 = vsel %vm5174_vm14, %v2333_v36, %v2335_v47  ;;  %v2372_v38 = vsel %vm5175_vm15, %v2331_v23, %v2333_v36 }
 0x883   : > { %v2376_v43 = vsel %vm5172_vm12, %v2341_v15, %v2343_v35  ;;  %v2377_v14 = vsel %vm5173_vm13, %v2343_v35, %v2345_v49 }
 0x884   : > { %2510 = vmatprep.subr.mxu0 %v2377_v14 }
 0x885   : > { %v2323_v56 = vpop.permute.xlu1 %2322  ;;  %2511 = vmatpush1.msra.mxu0 %v2376_v43 }
 0x886   : > { %2512 = vmatprep.subr.mxu0 %v2373_v18  ;;  %v2325_v40 = vpop.permute.xlu0 %2324  ;;  %v2368_v16 = vsel %vm5176_vm5, %v2321_v34, %v2323_v56 }
 0x887   : > { %2513 = vmatpush1.msra.mxu0 %v2372_v38  ;;  %v2369_v50 = vsel %vm5165_vm0, %v2323_v56, %v2325_v40 }
 0x888   : > { %2514 = vmatprep.subr.mxu0 %v2369_v50 }
 0x889   : > { %v2571_v6 = vpop.permute.xlu1 %2570  ;;  %2515 = vmatpush1.msra.mxu0 %v2368_v16 }
 0x88a   : > { %3488 = vmatmul.mubr.msk.f32.vlgmr.msra.gmra.mxu0 %vm797_vm10, %v2289_v27  ;;  %v2573_v17 = vpop.permute.xlu0 %2572  ;;  %3611 = vmatprep.subr.mxu0 %v3750_v32  ;;  %v2576_v2 = vsel %vm1728_vm2, %v4949_v4, %v2571_v6  ;;  %vm5005_vm10 = vcmp.eq.s32.totalorder %v2748_v13, %v2749_v39 }
 0x88b   : > { %v2577_v41 = vsel %vm1728_vm2, %v2571_v6, %v2573_v17  ;;  %3615 = vmatprep.mubr.msk.f32.mxu0 %vm3752_vm11, %v3750_v32  ;;  %3612 = vmatpush3.msk.msra.mxu0 %vm5005_vm10, %v3766_v59  ;;  %vm2756_vm2 = vcmask 130048  }
 0x88c   : > { %3492 = vmatprep.subr.msk.mxu1 %vm658_vm1, %v2577_v41  ;;  %3613 = vmatprep.subr.mxu0 %v3750_v32 }
 0x88d   : > { %3493 = vmatpush1.msk.msra.mxu1 %vm658_vm1, %v2576_v2  ;;  %vm5016_vm1 = vcmp.eq.s32.totalorder %v2747_v37, %v2749_v39 }
 0x88e   : > { %3494 = vmatmul.mubr.msk.f32.vlgmr.msra.gmra.mxu1 %vm2578_vm8, %v2555_v0  ;;  %3604 = vmatprep.subr.mxu1 %v3750_v32  ;;  %vm3388_vm8 = vcmask 392192  }
 0x88f   : > { %3608 = vmatprep.mubr.msk.f32.mxu1 %vm3752_vm11, %v3750_v32  ;;  %3605 = vmatpush3.msk.msra.mxu1 %vm5005_vm10, %v3766_v59 }
 0x890   : > { %3606 = vmatprep.subr.mxu1 %v3750_v32  ;;  %3614 = vmatpush3.msk.msra.mxu0 %vm5016_vm1, %v3766_v59 }
 0x891   : > { %3607 = vmatpush3.msk.msra.mxu1 %vm5016_vm1, %v3766_v59  ;;  %3625 = vmatprep.subr.mxu0 %v3750_v32 }
 0x892   : > { %3618 = vmatprep.subr.mxu1 %v3750_v32 }
 0x896   : > { %v2294_v60 = vpop.permute.xlu1 %2293 }
 0x897   : > { %v2740_v25 = vpop.permute.xlu0 %2739 }
 0x93a   : > { %v2479_v28 = vpop.f32.mrf.mxu1 }
 0x93b   : > { %v2480_v4 = vadd.f32 %v2479_v28, %v2294_v60 }
 0x93c   : > { %v2481_v63 = vpop.f32.mrf.mxu1 }
 0x93d   : > { %v2482_v44 = vadd.f32 %v2481_v63, %v2294_v60 }
 0x93e   : > { %v2656_v54 = vpop.f32.mrf.mxu1 }
 0x93f   : > { %v2732_v31 = vadd.f32 %v2656_v54, %v2480_v4 }
 0x940   : > { %v2658_v30 = vpop.f32.mrf.mxu1 }
 0x941   : > { %v2742_v9 = vadd.f32 %v2740_v25, %v2732_v31  ;;  %v2733_v1 = vadd.f32 %v2658_v30, %v2482_v44 }
 0x943   : > { %v2743_v11 = vadd.f32 %v2740_v25, %v2733_v1  ;;  %2830 = vrot.lane.b32.xlu1 %v2742_v9, %s3742_s24  ;;  %3609 = vmatmul.mubr.msk.f32.vlgmr.msra.gmra.mxu1 %vm2756_vm2, %v2742_v9  ;;  %s3768_s24 = smov 112  }
 0x944   : > { %3619 = vmatpush3.msk.msra.mxu1 %vm5005_vm10, %v3766_v59  ;;  %3622 = vmatprep.mubr.msk.f32.mxu1 %vm3752_vm11, %v3750_v32 }
 0x945   : > { %2905 = vrot.lane.b32.xlu0 %v2743_v11, %s3749_s12  ;;  %3620 = vmatprep.subr.mxu1 %v3750_v32  ;;  %s3769_s12 = smov 44  }
 0x946   : > { %3621 = vmatpush3.msk.msra.mxu1 %vm5016_vm1, %v3766_v59 }
 0x947   : > { %2979 = vrot.lane.b32.xlu1 %v2743_v11, %s3767_s19  ;;  %3632 = vmatprep.subr.mxu1 %v3750_v32 }
 0x94a   : > { %v2550_v45 = vpop.f32.mrf.mxu0 }
 0x94b   : > { %v2551_v12 = vadd.f32 %v2550_v45, %v2294_v60 }
 0x94c   : > { %v2552_v55 = vpop.f32.mrf.mxu0 }
 0x94d   : > { %v2553_v3 = vadd.f32 %v2552_v55, %v2294_v60 }
 0x94e   : > { %v2727_v57 = vpop.f32.mrf.mxu1 }
 0x94f   : > { %v2734_v46 = vadd.f32 %v2727_v57, %v2551_v12 }
 0x950   : > { %v2729_v22 = vpop.f32.mrf.mxu1 }
 0x951   : > { %v2744_v61 = vadd.f32 %v2740_v25, %v2734_v46  ;;  %v2735_v48 = vadd.f32 %v2729_v22, %v2553_v3 }
 0x953   : > { %3054 = vrot.lane.b32.xlu0 %v2744_v61, %s3768_s24  ;;  %3128 = vrot.lane.b32.xlu1 %v2744_v61, %s3769_s12  ;;  %v2745_v19 = vadd.f32 %v2740_v25, %v2735_v48 }
 0x957   : > { %3203 = vrot.lane.b32.xlu0 %v2745_v19, %s3770_s21  ;;  %3277 = vrot.lane.b32.xlu1 %v2745_v19, %s3771_s14 }
 0x9b5   : > { %v2831_v15 = vpop.permute.xlu1 %2830 }
 0x9b6   : > { %3616 = vmatmul.mubr.msk.f32.vlgmr.msra.gmra.mxu0 %vm2756_vm2, %v2831_v15 }
 0x9b7   : > { %v2906_v8 = vpop.permute.xlu0 %2905  ;;  %3626 = vmatpush3.msk.msra.mxu0 %vm5005_vm10, %v3766_v59  ;;  %3629 = vmatprep.mubr.msk.f32.mxu0 %vm3752_vm11, %v3750_v32 }
 0x9b8   : > { %3623 = vmatmul.mubr.msk.f32.vlgmr.msra.gmra.mxu1 %vm2756_vm2, %v2906_v8  ;;  %3627 = vmatprep.subr.mxu0 %v3750_v32 }
 0x9b9   : > { %3628 = vmatpush3.msk.msra.mxu0 %vm5016_vm1, %v3766_v59  ;;  %v2980_v10 = vpop.permute.xlu1 %2979  ;;  %3633 = vmatpush3.msk.msra.mxu1 %vm5005_vm10, %v3766_v59 }
 0x9ba   : > { %3630 = vmatmul.mubr.msk.f32.vlgmr.msra.gmra.mxu0 %vm2756_vm2, %v2980_v10  ;;  %3639 = vmatprep.subr.mxu0 %v3750_v32 }
 0x9bb   : > { %3640 = vmatpush3.msk.msra.mxu0 %vm5005_vm10, %v3766_v59  ;;  %3634 = vmatprep.subr.mxu1 %v3750_v32 }
 0x9bc   : > { %3641 = vmatprep.subr.mxu0 %v3750_v32  ;;  %3643 = vmatprep.mubr.msk.f32.mxu0 %vm3752_vm11, %v3750_v32 }
 0x9bd   : > { %3642 = vmatpush3.msk.msra.mxu0 %vm5016_vm1, %v3766_v59  ;;  %3635 = vmatpush3.msk.msra.mxu1 %vm5016_vm1, %v3766_v59 }
 0x9be   : > { %3636 = vmatprep.mubr.msk.f32.mxu1 %vm3752_vm11, %v3750_v32  ;;  %3646 = vmatprep.subr.mxu1 %v3750_v32 }
 0x9bf   : > { %3653 = vmatprep.subr.mxu0 %v3750_v32 }
 0x9c5   : > { %v3055_v23 = vpop.permute.xlu0 %3054  ;;  %v3129_v24 = vpop.permute.xlu1 %3128 }
 0x9c6   : > { %3637 = vmatmul.mubr.msk.f32.vlgmr.msra.gmra.mxu1 %vm2756_vm2, %v3055_v23  ;;  %3644 = vmatmul.mubr.msk.f32.vlgmr.msra.gmra.mxu0 %vm2756_vm2, %v3129_v24 }
 0x9c7   : > { %3647 = vmatpush3.msk.msra.mxu1 %vm5005_vm10, %v3766_v59  ;;  %3654 = vmatpush3.msk.msra.mxu0 %vm5005_vm10, %v3766_v59 }
 0x9c8   : > { %3648 = vmatprep.subr.mxu1 %v3750_v32  ;;  %3655 = vmatprep.subr.mxu0 %v3750_v32 }
 0x9c9   : > { %v3204_v21 = vpop.permute.xlu0 %3203  ;;  %3656 = vmatpush3.msk.msra.mxu0 %vm5016_vm1, %v3766_v59  ;;  %3657 = vmatprep.mubr.msk.f32.mxu0 %vm3752_vm11, %v3750_v32  ;;  %v3278_v33 = vpop.permute.xlu1 %3277 }
 0x9ca   : > { %3649 = vmatpush3.msk.msra.mxu1 %vm5016_vm1, %v3766_v59  ;;  %3650 = vmatprep.mubr.msk.f32.mxu1 %vm3752_vm11, %v3750_v32  ;;  %vm3379_vm11 = vcmask 64512  }
 0x9cb   : > { %3651 = vmatmul.mubr.msk.f32.vlgmr.msra.gmra.mxu1 %vm2756_vm2, %v3204_v21  ;;  %3658 = vmatmul.mubr.msk.f32.vlgmr.msra.gmra.mxu0 %vm2756_vm2, %v3278_v33 }
 0xa03   : > { %v2826_v5 = vpop.f32.mrf.mxu1 }
 0xa05   : > { %v3610_v34 = vpop.f32.mrf.mxu1 }
 0xa76   : > { %v2900_v51 = vpop.f32.mrf.mxu0 }
 0xa77   : > { %3352 = vrot.lane.b32.xlu0 %v2900_v51, %s3772_s20 }
 0xa78   : > { %v3617_v27 = vpop.f32.mrf.mxu0  ;;  %v2975_v42 = vpop.f32.mrf.mxu1 }
 0xa79   : > { %3356 = vrot.lane.b32.xlu1 %v2975_v42, %s3773_s13 }
 0xa7a   : > { %v3624_v53 = vpop.f32.mrf.mxu1  ;;  %v3049_v58 = vpop.f32.mrf.mxu0 }
 0xa7b   : > { %3360 = vrot.lane.b32.xlu0 %v3049_v58, %s3774_s15 }
 0xa7c   : > { %v3631_v20 = vpop.f32.mrf.mxu0 }
 0xa86   : > { %v3124_v47 = vpop.f32.mrf.mxu1  ;;  %v3198_v32 = vpop.f32.mrf.mxu0 }
 0xa87   : > { %3368 = vrot.lane.b32.xlu0 %v3198_v32, %s3775_s16  ;;  %3364 = vrot.lane.b32.xlu1 %v3124_v47, %s3776_s23 }
 0xa88   : > { %v3638_v0 = vpop.f32.mrf.mxu1  ;;  %v3645_v49 = vpop.f32.mrf.mxu0 }
 0xa8b   : > { %v3273_v7 = vpop.f32.mrf.mxu1  ;;  %v3347_v29 = vpop.f32.mrf.mxu0 }
 0xa8c   : > { %3376 = vrot.lane.b32.xlu0 %v3347_v29, %s3777_s25  ;;  %3372 = vrot.lane.b32.xlu1 %v3273_v7, %s3778_s26 }
 0xa8d   : > { %v3652_v62 = vpop.f32.mrf.mxu1  ;;  %v3659_v36 = vpop.f32.mrf.mxu0 }
 0xae9   : > { %v3353_v35 = vpop.permute.xlu0 %3352 }
 0xaea   : > { %v3380_v43 = vsel %vm3379_vm11, %v2826_v5, %v3353_v35 }
 0xaeb   : > { %v3357_v14 = vpop.permute.xlu1 %3356 }
 0xaec   : > { %v3381_v18 = vsel %vm2756_vm2, %v3380_v43, %v3357_v14 }
 0xaed   : > { %v3361_v56 = vpop.permute.xlu0 %3360 }
 0xaee   : > { %v3383_v50 = vsel %vm3382_vm7, %v3381_v18, %v3361_v56 }
 0xaf9   : > { %v3369_v38 = vpop.permute.xlu0 %3368  ;;  %v3365_v40 = vpop.permute.xlu1 %3364 }
 0xafa   : > { %v3385_v16 = vsel %vm3384_vm3, %v3383_v50, %v3365_v40 }
 0xafb   : > { %v3387_v17 = vsel %vm3386_vm6, %v3385_v16, %v3369_v38 }
 0xafe   : > { %v3377_v6 = vpop.permute.xlu0 %3376  ;;  %v3373_v41 = vpop.permute.xlu1 %3372 }
 0xaff   : > { %v3389_v2 = vsel %vm3388_vm8, %v3387_v17, %v3373_v41 }
 0xb00   : > { %v3391_v37 = vsel %vm3390_vm4, %v3389_v2, %v3377_v6 }
 0xb01   : > { %3393 = vst.msk [vmem:[%s384_s29] sm:$0xff] %vm3392_vm9, %v3391_v37 }
 0xb02 PF: > { %s21_s17 = sadd.s32 1, %s3739_s17  }
 0xb03   : > { %p18_p4 = scmp.ge.s32.totalorder %s21_s17, 4  }
 0xb05   :  { %20 = sbr.rel (!%p18_p4) target bundleno = 1 (0x1), region = 94 }

</bundles_post_ra>
